<compile_context>
chip_gen: v7x
topology: tpu7x:2x2x1
jax: 0.10.0
libtpu: 0.0.40
codegen_flags: <defaults>
</compile_context>

<pallas_src>
import functools

import jax
import jax.numpy as jnp
from jax.experimental import pallas as pl
from jax.experimental.pallas import tpu as pltpu


def _attentive_block_kernel(
    xq_ref, xkv_ref, posq_ref, posk_ref,
    gq_ref, bq_ref, gk_ref, bk_ref, gv_ref, bv_ref,
    wq_ref, wk_ref, wv_ref, wp_ref, bp_ref,
    o_ref,
    q_in_scr, k_in_scr, v_in_scr, k_scr, v_scr, acc_scr,
    *, heads_per_group, head_dim, eps,
):
    f32 = jnp.float32
    bf16 = jnp.bfloat16

    grp = pl.program_id(2)
    first_grp = grp == 0
    last_grp = grp == pl.num_programs(2) - 1
    first_qtile = pl.program_id(1) == 0

    def layer_norm(x, g, b):
        # One-pass statistics (E[x], E[x^2]) in f32.
        mu = jnp.mean(x, axis=-1, keepdims=True)
        var = jnp.mean(x * x, axis=-1, keepdims=True) - mu * mu
        inv = jax.lax.rsqrt(var + eps)
        return (x - mu) * inv * g + b

    # ---- per (batch, q-tile): LayerNorm the q activations once, reuse across
    # head groups; also zero the output-projection accumulator.
    @pl.when(first_grp)
    def _():
        xq = xq_ref[0].astype(f32) + posq_ref[0].astype(f32)
        q_in_scr[...] = layer_norm(xq, gq_ref[...], bq_ref[...]).astype(bf16)
        acc_scr[...] = jnp.zeros_like(acc_scr)

    # ---- per batch element: LayerNorm of the K/V activations, hoisted out of
    # the q-tile loop (computed only at qi == 0, grp == 0).
    @pl.when(jnp.logical_and(first_grp, first_qtile))
    def _():
        xkv = xkv_ref[0].astype(f32)
        xk = xkv + posk_ref[0].astype(f32)
        k_in_scr[...] = layer_norm(xk, gk_ref[...], bk_ref[...]).astype(bf16)
        v_in_scr[...] = layer_norm(xkv, gv_ref[...], bv_ref[...]).astype(bf16)

    # ---- per (batch, head-group): K/V projections, cached across all q tiles.
    @pl.when(first_qtile)
    def _():
        k_scr[grp] = jnp.dot(k_in_scr[...], wk_ref[...],
                             preferred_element_type=f32).astype(bf16)
        v_scr[grp] = jnp.dot(v_in_scr[...], wv_ref[...],
                             preferred_element_type=f32).astype(bf16)

    # ---- Q projection for this head group (q scale pre-folded into Wq).
    qg = jnp.dot(q_in_scr[...], wq_ref[...],
                 preferred_element_type=f32).astype(bf16)      # (Tq, panel)
    kg = k_scr[grp]                                            # (Nk, panel)
    vg = v_scr[grp]                                            # (Nk, panel)

    hd = head_dim
    for i in range(heads_per_group):                           # 1-2 iters at prod
        lo = i * hd
        qh = qg[:, lo:lo + hd]                                 # (Tq, hd) bf16
        kh = kg[:, lo:lo + hd]                                 # (Nk, hd) bf16
        vh = vg[:, lo:lo + hd]                                 # (Nk, hd) bf16

        s = jax.lax.dot_general(qh, kh, (((1,), (1,)), ((), ())),
                                preferred_element_type=f32)    # (Tq, Nk) f32

        m = jnp.max(s, axis=-1, keepdims=True)
        p = jnp.exp(s - m)
        denom = jnp.sum(p, axis=-1, keepdims=True)

        ctx = jnp.dot(p.astype(bf16), vh, preferred_element_type=f32)  # (Tq, hd)
        # Normalize after the PV matmul (Tq*hd multiplies, not Tq*Nk).
        ctx = (ctx * pl.reciprocal(denom, approx=True)).astype(bf16)

        # This head's slice of the output projection, accumulated in f32.
        acc_scr[...] += jnp.dot(ctx, wp_ref[lo:lo + hd, :],
                                preferred_element_type=f32)    # (Tq, C_out)

    @pl.when(last_grp)
    def _():
        o_ref[0] = (acc_scr[...] + bp_ref[...].astype(f32)).astype(o_ref.dtype)


def _pick_tile_q(nq, cap):
    """Largest divisor of nq that is <= cap and sublane-aligned (%8 == 0)."""
    if nq <= cap:
        return nq
    for d in range(cap, 0, -1):
        if nq % d == 0 and d % 8 == 0:
            return d
    # TODO(synk): pad Nq on the host instead of a full-Nq block for awkward Nq.
    return nq


def _pick_heads_per_group(num_heads, head_dim):
    """Smallest divisor g of num_heads with a 128-lane-aligned panel g*head_dim."""
    for g in range(1, num_heads + 1):
        if num_heads % g == 0 and (g * head_dim) % 128 == 0:
            return g
    return num_heads  # fall back to the full C panel (always legal: full dim)


def attentive_block_pallas(x_q, x_kv, pos_q, pos_k, params, *, num_heads,
                           tile_q_cap=256, vmem_limit_bytes=56 * 1024 * 1024,
                           cast_inputs_to_bf16=True):
    B, Nq, C = x_q.shape
    Bk, Nk, Ck = x_kv.shape
    assert Bk == B and Ck == C
    assert C % num_heads == 0, "dim must equal num_heads * head_dim"
    head_dim = C // num_heads
    C_out = params["wp"].shape[1]
    scale = head_dim ** (-0.5)

    tile_q = _pick_tile_q(Nq, tile_q_cap)      # raise tile_q_cap on v5e/v6e
    n_q_tiles = Nq // tile_q
    heads_per_group = _pick_heads_per_group(num_heads, head_dim)
    n_groups = num_heads // heads_per_group
    panel = heads_per_group * head_dim

    # Host-side prep: fold the q scale into Wq, cast weights (and optionally
    # activations) to bf16 so MXU matmuls run at native bf16 rate.
    wq = (params["wq"] * scale).astype(jnp.bfloat16)
    wk = params["wk"].astype(jnp.bfloat16)
    wv = params["wv"].astype(jnp.bfloat16)
    wp = params["wp"].astype(jnp.bfloat16)
    act_dtype = jnp.bfloat16 if cast_inputs_to_bf16 else x_q.dtype
    x_q_c = x_q.astype(act_dtype)
    x_kv_c = x_kv.astype(act_dtype)
    pos_q_c = pos_q.astype(act_dtype)
    pos_k_c = pos_k.astype(act_dtype)

    kernel = functools.partial(
        _attentive_block_kernel,
        heads_per_group=heads_per_group,
        head_dim=head_dim,
        eps=1e-5,
    )

    q_act = pl.BlockSpec((1, tile_q, C), lambda b, qi, g: (b, qi, 0))
    # TODO(synk): on v7x, pipeline_mode=pl.Buffered(1) on the two kv streams
    # (block index changes only once per batch step) saves another ~2x VMEM.
    kv_act = pl.BlockSpec((1, Nk, C), lambda b, qi, g: (b, 0, 0))
    vec_c = pl.BlockSpec((1, C), lambda b, qi, g: (0, 0))
    vec_co = pl.BlockSpec((1, C_out), lambda b, qi, g: (0, 0))
    w_col = pl.BlockSpec((C, panel), lambda b, qi, g: (0, g))      # Wq/Wk/Wv panel
    wp_row = pl.BlockSpec((panel, C_out), lambda b, qi, g: (g, 0))  # Wproj row panel

    return pl.pallas_call(
        kernel,
        out_shape=jax.ShapeDtypeStruct((B, Nq, C_out), x_q.dtype),
        grid=(B, n_q_tiles, n_groups),
        in_specs=[
            q_act,            # x_q
            kv_act,           # x_kv
            q_act,            # pos_q
            kv_act,           # pos_k
            vec_c, vec_c,     # ln_q gamma / beta
            vec_c, vec_c,     # ln_k gamma / beta
            vec_c, vec_c,     # ln_v gamma / beta
            w_col,            # Wq (scale folded in, bf16)
            w_col,            # Wk (bf16)
            w_col,            # Wv (bf16)
            wp_row,           # Wproj (bf16)
            vec_co,           # proj bias
        ],
        out_specs=pl.BlockSpec((1, tile_q, C_out), lambda b, qi, g: (b, qi, 0)),
        scratch_shapes=[
            pltpu.VMEM((tile_q, C), jnp.bfloat16),          # normed q (per q-tile)
            pltpu.VMEM((Nk, C), jnp.bfloat16),              # normed k (per batch)
            pltpu.VMEM((Nk, C), jnp.bfloat16),              # normed v (per batch)
            pltpu.VMEM((n_groups, Nk, panel), jnp.bfloat16),  # cached K proj
            pltpu.VMEM((n_groups, Nk, panel), jnp.bfloat16),  # cached V proj
            pltpu.VMEM((tile_q, C_out), jnp.float32),       # output-proj accumulator
        ],
        compiler_params=pltpu.CompilerParams(
            dimension_semantics=("parallel", "arbitrary", "arbitrary"),
            vmem_limit_bytes=vmem_limit_bytes,
        ),
    )(
        x_q_c, x_kv_c, pos_q_c, pos_k_c,
        params["gq"], params["bq"], params["gk"], params["bk"],
        params["gv"], params["bv"],
        wq, wk, wv, wp, params["bp"],
    )


def attentive_block_reference(x_q, x_kv, pos_q, pos_k, params, *, num_heads):
    """Plain-JAX f32 reference mirroring the PyTorch module (eval mode)."""
    C = x_q.shape[-1]
    head_dim = C // num_heads
    scale = head_dim ** (-0.5)
    eps = 1e-5

    def ln(x, g, b):
        mu = jnp.mean(x, axis=-1, keepdims=True)
        var = jnp.mean((x - mu) ** 2, axis=-1, keepdims=True)
        return (x - mu) / jnp.sqrt(var + eps) * g + b

    q_in = ln(x_q + pos_q, params["gq"], params["bq"])
    k_in = ln(x_kv + pos_k, params["gk"], params["bk"])
    v_in = ln(x_kv, params["gv"], params["bv"])

    B, Nq, _ = q_in.shape
    Nk = k_in.shape[1]
    q = (q_in @ params["wq"]).reshape(B, Nq, num_heads, head_dim).transpose(0, 2, 1, 3)
    k = (k_in @ params["wk"]).reshape(B, Nk, num_heads, head_dim).transpose(0, 2, 1, 3)
    v = (v_in @ params["wv"]).reshape(B, Nk, num_heads, head_dim).transpose(0, 2, 1, 3)

    attn = jax.nn.softmax((q * scale) @ k.transpose(0, 1, 3, 2), axis=-1)
    ctx = (attn @ v).transpose(0, 2, 1, 3).reshape(B, Nq, C)
    return ctx @ params["wp"] + params["bp"]


if __name__ == "__main__":
    B, Nq, Nk, C = 2, 8, 16, 32
    num_heads = 4

    key = jax.random.PRNGKey(0)
    keys = jax.random.split(key, 12)

    x_q = jax.random.normal(keys[0], (B, Nq, C), jnp.float32)
    x_kv = jax.random.normal(keys[1], (B, Nk, C), jnp.float32)
    pos_q = jax.random.normal(keys[2], (B, Nq, C), jnp.float32) * 0.1
    pos_k = jax.random.normal(keys[3], (B, Nk, C), jnp.float32) * 0.1

    # Synthetic parameters (module __init__ shapes):
    #   norm1_{q,k,v}: LayerNorm(dim)                -> gamma/beta (C,)
    #   cross_attn.{q,k,v}: Linear(C, C, bias=False) -> weight (C, C)
    #   cross_attn.proj: Linear(C, C)                -> weight (C, C), bias (C,)
    # Linear weights stored pre-transposed as (C_in, C_out) so kernels do x @ W.
    params = {
        "gq": 1.0 + 0.02 * jax.random.normal(keys[4], (1, C), jnp.float32),
        "bq": 0.02 * jax.random.normal(keys[5], (1, C), jnp.float32),
        "gk": 1.0 + 0.02 * jax.random.normal(keys[6], (1, C), jnp.float32),
        "bk": 0.02 * jax.random.normal(keys[7], (1, C), jnp.float32),
        "gv": jnp.ones((1, C), jnp.float32),
        "bv": jnp.zeros((1, C), jnp.float32),
        "wq": jax.random.normal(keys[8], (C, C), jnp.float32) / jnp.sqrt(C),
        "wk": jax.random.normal(keys[9], (C, C), jnp.float32) / jnp.sqrt(C),
        "wv": jax.random.normal(keys[10], (C, C), jnp.float32) / jnp.sqrt(C),
        "wp": jax.random.normal(keys[11], (C, C), jnp.float32) / jnp.sqrt(C),
        "bp": 0.01 * jnp.ones((1, C), jnp.float32),
    }

    out = attentive_block_pallas(x_q, x_kv, pos_q, pos_k, params, num_heads=num_heads)
    out = jax.block_until_ready(out)

    ref = attentive_block_reference(x_q, x_kv, pos_q, pos_k, params, num_heads=num_heads)
    assert out.shape == (B, Nq, C)
    # bf16 activations/weights on the MXU + approx reciprocal => loose tolerance.
    assert jnp.allclose(out, ref, atol=5e-2, rtol=5e-2), "mismatch vs JAX reference"

    print("KERNEL_OK")
</pallas_src>

<mosaic_0001>
module attributes {stable_mosaic.version = 11 : i64} {
  func.func @_attentive_block_kernel(%arg0: i32, %arg1: i32, %arg2: i32, %arg3: memref<1x8x32xbf16, #tpu.memory_space<vmem>>, %arg4: memref<1x16x32xbf16, #tpu.memory_space<vmem>>, %arg5: memref<1x8x32xbf16, #tpu.memory_space<vmem>>, %arg6: memref<1x16x32xbf16, #tpu.memory_space<vmem>>, %arg7: memref<1x32xf32, #tpu.memory_space<vmem>>, %arg8: memref<1x32xf32, #tpu.memory_space<vmem>>, %arg9: memref<1x32xf32, #tpu.memory_space<vmem>>, %arg10: memref<1x32xf32, #tpu.memory_space<vmem>>, %arg11: memref<1x32xf32, #tpu.memory_space<vmem>>, %arg12: memref<1x32xf32, #tpu.memory_space<vmem>>, %arg13: memref<32x32xbf16, #tpu.memory_space<vmem>>, %arg14: memref<32x32xbf16, #tpu.memory_space<vmem>>, %arg15: memref<32x32xbf16, #tpu.memory_space<vmem>>, %arg16: memref<32x32xbf16, #tpu.memory_space<vmem>>, %arg17: memref<1x32xf32, #tpu.memory_space<vmem>>, %arg18: memref<1x8x32xf32, #tpu.memory_space<vmem>>, %arg19: memref<8x32xbf16, #tpu.memory_space<vmem>>, %arg20: memref<16x32xbf16, #tpu.memory_space<vmem>>, %arg21: memref<16x32xbf16, #tpu.memory_space<vmem>>, %arg22: memref<1x16x32xbf16, #tpu.memory_space<vmem>>, %arg23: memref<1x16x32xbf16, #tpu.memory_space<vmem>>, %arg24: memref<8x32xf32, #tpu.memory_space<vmem>>) attributes {dimension_semantics = [#tpu.dimension_semantics<parallel>, #tpu.dimension_semantics<arbitrary>, #tpu.dimension_semantics<arbitrary>], iteration_bounds = array<i64: 2, 1, 1>, scalar_prefetch = 0 : i64, scratch_operands = 6 : i64, tpu.core_type = #tpu.core_type<tc>, window_params = [{transform_indices = @transform_0, window_bounds = array<i64: 1, 8, 32>}, {transform_indices = @transform_1, window_bounds = array<i64: 1, 16, 32>}, {transform_indices = @transform_2, window_bounds = array<i64: 1, 8, 32>}, {transform_indices = @transform_3, window_bounds = array<i64: 1, 16, 32>}, {pipeline_mode = #tpu.pipeline_mode<synchronous>, transform_indices = @transform_4, window_bounds = array<i64: 1, 32>}, {pipeline_mode = #tpu.pipeline_mode<synchronous>, transform_indices = @transform_5, window_bounds = array<i64: 1, 32>}, {pipeline_mode = #tpu.pipeline_mode<synchronous>, transform_indices = @transform_6, window_bounds = array<i64: 1, 32>}, {pipeline_mode = #tpu.pipeline_mode<synchronous>, transform_indices = @transform_7, window_bounds = array<i64: 1, 32>}, {pipeline_mode = #tpu.pipeline_mode<synchronous>, transform_indices = @transform_8, window_bounds = array<i64: 1, 32>}, {pipeline_mode = #tpu.pipeline_mode<synchronous>, transform_indices = @transform_9, window_bounds = array<i64: 1, 32>}, {transform_indices = @transform_10, window_bounds = array<i64: 32, 32>}, {transform_indices = @transform_11, window_bounds = array<i64: 32, 32>}, {transform_indices = @transform_12, window_bounds = array<i64: 32, 32>}, {transform_indices = @transform_13, window_bounds = array<i64: 32, 32>}, {pipeline_mode = #tpu.pipeline_mode<synchronous>, transform_indices = @transform_14, window_bounds = array<i64: 1, 32>}, {transform_indices = @transform_15, window_bounds = array<i64: 1, 8, 32>}]} {
    %c0_i32 = arith.constant 0 : i32
    %0 = arith.cmpi eq, %arg2, %c0_i32 : i32
    %c0_i32_0 = arith.constant 0 : i32
    %1 = arith.cmpi eq, %arg2, %c0_i32_0 : i32
    %c0_i32_1 = arith.constant 0 : i32
    %2 = arith.cmpi eq, %arg1, %c0_i32_1 : i32
    %3 = arith.extui %0 : i1 to i32
    %c0_i32_2 = arith.constant 0 : i32
    %4 = arith.cmpi ne, %3, %c0_i32_2 : i32
    scf.if %4 {
      %c0_54 = arith.constant 0 : index
      %c0_55 = arith.constant 0 : index
      %c0_56 = arith.constant 0 : index
      %110 = vector.load %arg3[%c0_54, %c0_55, %c0_56] : memref<1x8x32xbf16, #tpu.memory_space<vmem>>, vector<1x8x32xbf16>
      %111 = vector.shape_cast %110 : vector<1x8x32xbf16> to vector<8x32xbf16>
      %112 = arith.extf %111 : vector<8x32xbf16> to vector<8x32xf32>
      %c0_57 = arith.constant 0 : index
      %c0_58 = arith.constant 0 : index
      %c0_59 = arith.constant 0 : index
      %113 = vector.load %arg5[%c0_57, %c0_58, %c0_59] : memref<1x8x32xbf16, #tpu.memory_space<vmem>>, vector<1x8x32xbf16>
      %114 = vector.shape_cast %113 : vector<1x8x32xbf16> to vector<8x32xbf16>
      %115 = arith.extf %114 : vector<8x32xbf16> to vector<8x32xf32>
      %116 = arith.addf %112, %115 : vector<8x32xf32>
      %c0_60 = arith.constant 0 : index
      %c0_61 = arith.constant 0 : index
      %117 = vector.load %arg7[%c0_60, %c0_61] : memref<1x32xf32, #tpu.memory_space<vmem>>, vector<1x32xf32>
      %c0_62 = arith.constant 0 : index
      %c0_63 = arith.constant 0 : index
      %118 = vector.load %arg8[%c0_62, %c0_63] : memref<1x32xf32, #tpu.memory_space<vmem>>, vector<1x32xf32>
      %cst_64 = arith.constant dense<0.000000e+00> : vector<8xf32>
      %119 = vector.multi_reduction <add>, %116, %cst_64 [1] : vector<8x32xf32> to vector<8xf32>
      %120 = vector.shape_cast %119 : vector<8xf32> to vector<8x1xf32>
      %cst_65 = arith.constant 3.200000e+01 : f32
      %121 = vector.broadcast %cst_65 : f32 to vector<8x1xf32>
      %122 = arith.divf %120, %121 : vector<8x1xf32>
      %123 = arith.mulf %116, %116 : vector<8x32xf32>
      %cst_66 = arith.constant dense<0.000000e+00> : vector<8xf32>
      %124 = vector.multi_reduction <add>, %123, %cst_66 [1] : vector<8x32xf32> to vector<8xf32>
      %125 = vector.shape_cast %124 : vector<8xf32> to vector<8x1xf32>
      %cst_67 = arith.constant 3.200000e+01 : f32
      %126 = vector.broadcast %cst_67 : f32 to vector<8x1xf32>
      %127 = arith.divf %125, %126 : vector<8x1xf32>
      %128 = arith.mulf %122, %122 : vector<8x1xf32>
      %129 = arith.subf %127, %128 : vector<8x1xf32>
      %cst_68 = arith.constant 9.99999974E-6 : f32
      %130 = vector.broadcast %cst_68 : f32 to vector<8x1xf32>
      %131 = arith.addf %129, %130 : vector<8x1xf32>
      %132 = math.rsqrt %131 : vector<8x1xf32>
      %133 = vector.broadcast %122 : vector<8x1xf32> to vector<8x32xf32>
      %134 = arith.subf %116, %133 : vector<8x32xf32>
      %135 = vector.broadcast %132 : vector<8x1xf32> to vector<8x32xf32>
      %136 = arith.mulf %134, %135 : vector<8x32xf32>
      %137 = vector.broadcast %117 : vector<1x32xf32> to vector<8x32xf32>
      %138 = arith.mulf %136, %137 : vector<8x32xf32>
      %139 = vector.broadcast %118 : vector<1x32xf32> to vector<8x32xf32>
      %140 = arith.addf %138, %139 : vector<8x32xf32>
      %141 = arith.truncf %140 : vector<8x32xf32> to vector<8x32xbf16>
      %c0_69 = arith.constant 0 : index
      %c0_70 = arith.constant 0 : index
      %142 = vector.load %arg19[%c0_69, %c0_70] : memref<8x32xbf16, #tpu.memory_space<vmem>>, vector<8x32xbf16>
      tpu.vector_store %arg19[%c0_69, %c0_70], %141 {strides = array<i32>} : memref<8x32xbf16, #tpu.memory_space<vmem>>, vector<8x32xbf16>,
      %cst_71 = arith.constant 0.000000e+00 : f32
      %143 = vector.broadcast %cst_71 : f32 to vector<8x32xf32>
      %c0_72 = arith.constant 0 : index
      %c0_73 = arith.constant 0 : index
      %144 = vector.load %arg24[%c0_72, %c0_73] : memref<8x32xf32, #tpu.memory_space<vmem>>, vector<8x32xf32>
      tpu.vector_store %arg24[%c0_72, %c0_73], %143 {strides = array<i32>} : memref<8x32xf32, #tpu.memory_space<vmem>>, vector<8x32xf32>,
    } else {
    }
    %5 = arith.andi %0, %2 : i1
    %6 = arith.extui %5 : i1 to i32
    %c0_i32_3 = arith.constant 0 : i32
    %7 = arith.cmpi ne, %6, %c0_i32_3 : i32
    scf.if %7 {
      %c0_54 = arith.constant 0 : index
      %c0_55 = arith.constant 0 : index
      %c0_56 = arith.constant 0 : index
      %110 = vector.load %arg4[%c0_54, %c0_55, %c0_56] : memref<1x16x32xbf16, #tpu.memory_space<vmem>>, vector<1x16x32xbf16>
      %111 = vector.shape_cast %110 : vector<1x16x32xbf16> to vector<16x32xbf16>
      %112 = arith.extf %111 : vector<16x32xbf16> to vector<16x32xf32>
      %c0_57 = arith.constant 0 : index
      %c0_58 = arith.constant 0 : index
      %c0_59 = arith.constant 0 : index
      %113 = vector.load %arg6[%c0_57, %c0_58, %c0_59] : memref<1x16x32xbf16, #tpu.memory_space<vmem>>, vector<1x16x32xbf16>
      %114 = vector.shape_cast %113 : vector<1x16x32xbf16> to vector<16x32xbf16>
      %115 = arith.extf %114 : vector<16x32xbf16> to vector<16x32xf32>
      %116 = arith.addf %112, %115 : vector<16x32xf32>
      %c0_60 = arith.constant 0 : index
      %c0_61 = arith.constant 0 : index
      %117 = vector.load %arg9[%c0_60, %c0_61] : memref<1x32xf32, #tpu.memory_space<vmem>>, vector<1x32xf32>
      %c0_62 = arith.constant 0 : index
      %c0_63 = arith.constant 0 : index
      %118 = vector.load %arg10[%c0_62, %c0_63] : memref<1x32xf32, #tpu.memory_space<vmem>>, vector<1x32xf32>
      %cst_64 = arith.constant dense<0.000000e+00> : vector<16xf32>
      %119 = vector.multi_reduction <add>, %116, %cst_64 [1] : vector<16x32xf32> to vector<16xf32>
      %120 = vector.shape_cast %119 : vector<16xf32> to vector<16x1xf32>
      %cst_65 = arith.constant 3.200000e+01 : f32
      %121 = vector.broadcast %cst_65 : f32 to vector<16x1xf32>
      %122 = arith.divf %120, %121 : vector<16x1xf32>
      %123 = arith.mulf %116, %116 : vector<16x32xf32>
      %cst_66 = arith.constant dense<0.000000e+00> : vector<16xf32>
      %124 = vector.multi_reduction <add>, %123, %cst_66 [1] : vector<16x32xf32> to vector<16xf32>
      %125 = vector.shape_cast %124 : vector<16xf32> to vector<16x1xf32>
      %cst_67 = arith.constant 3.200000e+01 : f32
      %126 = vector.broadcast %cst_67 : f32 to vector<16x1xf32>
      %127 = arith.divf %125, %126 : vector<16x1xf32>
      %128 = arith.mulf %122, %122 : vector<16x1xf32>
      %129 = arith.subf %127, %128 : vector<16x1xf32>
      %cst_68 = arith.constant 9.99999974E-6 : f32
      %130 = vector.broadcast %cst_68 : f32 to vector<16x1xf32>
      %131 = arith.addf %129, %130 : vector<16x1xf32>
      %132 = math.rsqrt %131 : vector<16x1xf32>
      %133 = vector.broadcast %122 : vector<16x1xf32> to vector<16x32xf32>
      %134 = arith.subf %116, %133 : vector<16x32xf32>
      %135 = vector.broadcast %132 : vector<16x1xf32> to vector<16x32xf32>
      %136 = arith.mulf %134, %135 : vector<16x32xf32>
      %137 = vector.broadcast %117 : vector<1x32xf32> to vector<16x32xf32>
      %138 = arith.mulf %136, %137 : vector<16x32xf32>
      %139 = vector.broadcast %118 : vector<1x32xf32> to vector<16x32xf32>
      %140 = arith.addf %138, %139 : vector<16x32xf32>
      %141 = arith.truncf %140 : vector<16x32xf32> to vector<16x32xbf16>
      %c0_69 = arith.constant 0 : index
      %c0_70 = arith.constant 0 : index
      %142 = vector.load %arg20[%c0_69, %c0_70] : memref<16x32xbf16, #tpu.memory_space<vmem>>, vector<16x32xbf16>
      tpu.vector_store %arg20[%c0_69, %c0_70], %141 {strides = array<i32>} : memref<16x32xbf16, #tpu.memory_space<vmem>>, vector<16x32xbf16>,
      %c0_71 = arith.constant 0 : index
      %c0_72 = arith.constant 0 : index
      %143 = vector.load %arg11[%c0_71, %c0_72] : memref<1x32xf32, #tpu.memory_space<vmem>>, vector<1x32xf32>
      %c0_73 = arith.constant 0 : index
      %c0_74 = arith.constant 0 : index
      %144 = vector.load %arg12[%c0_73, %c0_74] : memref<1x32xf32, #tpu.memory_space<vmem>>, vector<1x32xf32>
      %cst_75 = arith.constant dense<0.000000e+00> : vector<16xf32>
      %145 = vector.multi_reduction <add>, %112, %cst_75 [1] : vector<16x32xf32> to vector<16xf32>
      %146 = vector.shape_cast %145 : vector<16xf32> to vector<16x1xf32>
      %cst_76 = arith.constant 3.200000e+01 : f32
      %147 = vector.broadcast %cst_76 : f32 to vector<16x1xf32>
      %148 = arith.divf %146, %147 : vector<16x1xf32>
      %149 = arith.mulf %112, %112 : vector<16x32xf32>
      %cst_77 = arith.constant dense<0.000000e+00> : vector<16xf32>
      %150 = vector.multi_reduction <add>, %149, %cst_77 [1] : vector<16x32xf32> to vector<16xf32>
      %151 = vector.shape_cast %150 : vector<16xf32> to vector<16x1xf32>
      %cst_78 = arith.constant 3.200000e+01 : f32
      %152 = vector.broadcast %cst_78 : f32 to vector<16x1xf32>
      %153 = arith.divf %151, %152 : vector<16x1xf32>
      %154 = arith.mulf %148, %148 : vector<16x1xf32>
      %155 = arith.subf %153, %154 : vector<16x1xf32>
      %cst_79 = arith.constant 9.99999974E-6 : f32
      %156 = vector.broadcast %cst_79 : f32 to vector<16x1xf32>
      %157 = arith.addf %155, %156 : vector<16x1xf32>
      %158 = math.rsqrt %157 : vector<16x1xf32>
      %159 = vector.broadcast %148 : vector<16x1xf32> to vector<16x32xf32>
      %160 = arith.subf %112, %159 : vector<16x32xf32>
      %161 = vector.broadcast %158 : vector<16x1xf32> to vector<16x32xf32>
      %162 = arith.mulf %160, %161 : vector<16x32xf32>
      %163 = vector.broadcast %143 : vector<1x32xf32> to vector<16x32xf32>
      %164 = arith.mulf %162, %163 : vector<16x32xf32>
      %165 = vector.broadcast %144 : vector<1x32xf32> to vector<16x32xf32>
      %166 = arith.addf %164, %165 : vector<16x32xf32>
      %167 = arith.truncf %166 : vector<16x32xf32> to vector<16x32xbf16>
      %c0_80 = arith.constant 0 : index
      %c0_81 = arith.constant 0 : index
      %168 = vector.load %arg21[%c0_80, %c0_81] : memref<16x32xbf16, #tpu.memory_space<vmem>>, vector<16x32xbf16>
      tpu.vector_store %arg21[%c0_80, %c0_81], %167 {strides = array<i32>} : memref<16x32xbf16, #tpu.memory_space<vmem>>, vector<16x32xbf16>,
    } else {
    }
    %8 = arith.extui %2 : i1 to i32
    %c0_i32_4 = arith.constant 0 : i32
    %9 = arith.cmpi ne, %8, %c0_i32_4 : i32
    scf.if %9 {
      %c0_54 = arith.constant 0 : index
      %c0_55 = arith.constant 0 : index
      %110 = vector.load %arg20[%c0_54, %c0_55] : memref<16x32xbf16, #tpu.memory_space<vmem>>, vector<16x32xbf16>
      %c0_56 = arith.constant 0 : index
      %c0_57 = arith.constant 0 : index
      %111 = vector.load %arg14[%c0_56, %c0_57] : memref<32x32xbf16, #tpu.memory_space<vmem>>, vector<32x32xbf16>
      %cst_58 = arith.constant dense<0.000000e+00> : vector<16x32xf32>
      %112 = tpu.matmul %110, %111, %cst_58 {dimension_numbers = #tpu.dot_dimension_numbers<[1], [0], [0], [1], [0, 0, 1, 1], [], []>} : vector<16x32xbf16>, vector<32x32xbf16>, vector<16x32xf32> -> vector<16x32xf32>
      %113 = arith.truncf %112 : vector<16x32xf32> to vector<16x32xbf16>
      %114 = arith.index_cast %arg2 : i32 to index
      %c0_59 = arith.constant 0 : index
      %c0_60 = arith.constant 0 : index
      %115 = vector.load %arg22[%114, %c0_59, %c0_60] : memref<1x16x32xbf16, #tpu.memory_space<vmem>>, vector<1x16x32xbf16>
      %116 = vector.shape_cast %115 : vector<1x16x32xbf16> to vector<16x32xbf16>
      %117 = vector.shape_cast %113 : vector<16x32xbf16> to vector<1x16x32xbf16>
      tpu.vector_store %arg22[%114, %c0_59, %c0_60], %117 {strides = array<i32>} : memref<1x16x32xbf16, #tpu.memory_space<vmem>>, vector<1x16x32xbf16>,
      %c0_61 = arith.constant 0 : index
      %c0_62 = arith.constant 0 : index
      %118 = vector.load %arg21[%c0_61, %c0_62] : memref<16x32xbf16, #tpu.memory_space<vmem>>, vector<16x32xbf16>
      %c0_63 = arith.constant 0 : index
      %c0_64 = arith.constant 0 : index
      %119 = vector.load %arg15[%c0_63, %c0_64] : memref<32x32xbf16, #tpu.memory_space<vmem>>, vector<32x32xbf16>
      %cst_65 = arith.constant dense<0.000000e+00> : vector<16x32xf32>
      %120 = tpu.matmul %118, %119, %cst_65 {dimension_numbers = #tpu.dot_dimension_numbers<[1], [0], [0], [1], [0, 0, 1, 1], [], []>} : vector<16x32xbf16>, vector<32x32xbf16>, vector<16x32xf32> -> vector<16x32xf32>
      %121 = arith.truncf %120 : vector<16x32xf32> to vector<16x32xbf16>
      %122 = arith.index_cast %arg2 : i32 to index
      %c0_66 = arith.constant 0 : index
      %c0_67 = arith.constant 0 : index
      %123 = vector.load %arg23[%122, %c0_66, %c0_67] : memref<1x16x32xbf16, #tpu.memory_space<vmem>>, vector<1x16x32xbf16>
      %124 = vector.shape_cast %123 : vector<1x16x32xbf16> to vector<16x32xbf16>
      %125 = vector.shape_cast %121 : vector<16x32xbf16> to vector<1x16x32xbf16>
      tpu.vector_store %arg23[%122, %c0_66, %c0_67], %125 {strides = array<i32>} : memref<1x16x32xbf16, #tpu.memory_space<vmem>>, vector<1x16x32xbf16>,
    } else {
    }
    %c0 = arith.constant 0 : index
    %c0_5 = arith.constant 0 : index
    %10 = vector.load %arg19[%c0, %c0_5] : memref<8x32xbf16, #tpu.memory_space<vmem>>, vector<8x32xbf16>
    %c0_6 = arith.constant 0 : index
    %c0_7 = arith.constant 0 : index
    %11 = vector.load %arg13[%c0_6, %c0_7] : memref<32x32xbf16, #tpu.memory_space<vmem>>, vector<32x32xbf16>
    %cst = arith.constant dense<0.000000e+00> : vector<8x32xf32>
    %12 = tpu.matmul %10, %11, %cst {dimension_numbers = #tpu.dot_dimension_numbers<[1], [0], [0], [1], [0, 0, 1, 1], [], []>} : vector<8x32xbf16>, vector<32x32xbf16>, vector<8x32xf32> -> vector<8x32xf32>
    %13 = arith.truncf %12 : vector<8x32xf32> to vector<8x32xbf16>
    %14 = arith.index_cast %arg2 : i32 to index
    %c0_8 = arith.constant 0 : index
    %c0_9 = arith.constant 0 : index
    %15 = vector.load %arg22[%14, %c0_8, %c0_9] : memref<1x16x32xbf16, #tpu.memory_space<vmem>>, vector<1x16x32xbf16>
    %16 = vector.shape_cast %15 : vector<1x16x32xbf16> to vector<16x32xbf16>
    %17 = arith.index_cast %arg2 : i32 to index
    %c0_10 = arith.constant 0 : index
    %c0_11 = arith.constant 0 : index
    %18 = vector.load %arg23[%17, %c0_10, %c0_11] : memref<1x16x32xbf16, #tpu.memory_space<vmem>>, vector<1x16x32xbf16>
    %19 = vector.shape_cast %18 : vector<1x16x32xbf16> to vector<16x32xbf16>
    %20 = vector.extract_strided_slice %13 {offsets = [0, 0], sizes = [8, 8], strides = [1, 1]} : vector<8x32xbf16> to vector<8x8xbf16>
    %21 = vector.extract_strided_slice %16 {offsets = [0, 0], sizes = [16, 8], strides = [1, 1]} : vector<16x32xbf16> to vector<16x8xbf16>
    %22 = vector.extract_strided_slice %19 {offsets = [0, 0], sizes = [16, 8], strides = [1, 1]} : vector<16x32xbf16> to vector<16x8xbf16>
    %cst_12 = arith.constant dense<0.000000e+00> : vector<8x16xf32>
    %23 = tpu.matmul %20, %21, %cst_12 {dimension_numbers = #tpu.dot_dimension_numbers<[1], [1], [0], [0], [0, 0, 1, 0], [], []>} : vector<8x8xbf16>, vector<16x8xbf16>, vector<8x16xf32> -> vector<8x16xf32>
    %cst_13 = arith.constant dense<0xFF800000> : vector<8xf32>
    %24 = vector.multi_reduction <maximumf>, %23, %cst_13 [1] : vector<8x16xf32> to vector<8xf32>
    %25 = vector.shape_cast %24 : vector<8xf32> to vector<8x1xf32>
    %26 = vector.broadcast %25 : vector<8x1xf32> to vector<8x16xf32>
    %27 = arith.subf %23, %26 : vector<8x16xf32>
    %28 = math.exp %27 : vector<8x16xf32>
    %cst_14 = arith.constant dense<0.000000e+00> : vector<8xf32>
    %29 = vector.multi_reduction <add>, %28, %cst_14 [1] : vector<8x16xf32> to vector<8xf32>
    %30 = vector.shape_cast %29 : vector<8xf32> to vector<8x1xf32>
    %31 = arith.truncf %28 : vector<8x16xf32> to vector<8x16xbf16>
    %cst_15 = arith.constant dense<0.000000e+00> : vector<8x8xf32>
    %32 = tpu.matmul %31, %22, %cst_15 {dimension_numbers = #tpu.dot_dimension_numbers<[1], [0], [0], [1], [0, 0, 1, 1], [], []>} : vector<8x16xbf16>, vector<16x8xbf16>, vector<8x8xf32> -> vector<8x8xf32>
    %33 = tpu.reciprocal %30 {approx = true} : vector<8x1xf32> -> vector<8x1xf32>
    %34 = vector.broadcast %33 : vector<8x1xf32> to vector<8x8xf32>
    %35 = arith.mulf %32, %34 : vector<8x8xf32>
    %36 = arith.truncf %35 : vector<8x8xf32> to vector<8x8xbf16>
    %c0_16 = arith.constant 0 : index
    %c0_17 = arith.constant 0 : index
    %37 = vector.load %arg24[%c0_16, %c0_17] : memref<8x32xf32, #tpu.memory_space<vmem>>, vector<8x32xf32>
    %c0_18 = arith.constant 0 : index
    %c0_19 = arith.constant 0 : index
    %38 = vector.load %arg16[%c0_18, %c0_19] : memref<32x32xbf16, #tpu.memory_space<vmem>>, vector<8x32xbf16>
    %cst_20 = arith.constant dense<0.000000e+00> : vector<8x32xf32>
    %39 = tpu.matmul %36, %38, %cst_20 {dimension_numbers = #tpu.dot_dimension_numbers<[1], [0], [0], [1], [0, 0, 1, 1], [], []>} : vector<8x8xbf16>, vector<8x32xbf16>, vector<8x32xf32> -> vector<8x32xf32>
    %40 = arith.addf %37, %39 : vector<8x32xf32>
    %c0_21 = arith.constant 0 : index
    %c0_22 = arith.constant 0 : index
    %41 = vector.load %arg24[%c0_21, %c0_22] : memref<8x32xf32, #tpu.memory_space<vmem>>, vector<8x32xf32>
    tpu.vector_store %arg24[%c0_21, %c0_22], %40 {strides = array<i32>} : memref<8x32xf32, #tpu.memory_space<vmem>>, vector<8x32xf32>,
    %42 = vector.extract_strided_slice %13 {offsets = [0, 8], sizes = [8, 8], strides = [1, 1]} : vector<8x32xbf16> to vector<8x8xbf16>
    %43 = vector.extract_strided_slice %16 {offsets = [0, 8], sizes = [16, 8], strides = [1, 1]} : vector<16x32xbf16> to vector<16x8xbf16>
    %44 = vector.extract_strided_slice %19 {offsets = [0, 8], sizes = [16, 8], strides = [1, 1]} : vector<16x32xbf16> to vector<16x8xbf16>
    %cst_23 = arith.constant dense<0.000000e+00> : vector<8x16xf32>
    %45 = tpu.matmul %42, %43, %cst_23 {dimension_numbers = #tpu.dot_dimension_numbers<[1], [1], [0], [0], [0, 0, 1, 0], [], []>} : vector<8x8xbf16>, vector<16x8xbf16>, vector<8x16xf32> -> vector<8x16xf32>
    %cst_24 = arith.constant dense<0xFF800000> : vector<8xf32>
    %46 = vector.multi_reduction <maximumf>, %45, %cst_24 [1] : vector<8x16xf32> to vector<8xf32>
    %47 = vector.shape_cast %46 : vector<8xf32> to vector<8x1xf32>
    %48 = vector.broadcast %47 : vector<8x1xf32> to vector<8x16xf32>
    %49 = arith.subf %45, %48 : vector<8x16xf32>
    %50 = math.exp %49 : vector<8x16xf32>
    %cst_25 = arith.constant dense<0.000000e+00> : vector<8xf32>
    %51 = vector.multi_reduction <add>, %50, %cst_25 [1] : vector<8x16xf32> to vector<8xf32>
    %52 = vector.shape_cast %51 : vector<8xf32> to vector<8x1xf32>
    %53 = arith.truncf %50 : vector<8x16xf32> to vector<8x16xbf16>
    %cst_26 = arith.constant dense<0.000000e+00> : vector<8x8xf32>
    %54 = tpu.matmul %53, %44, %cst_26 {dimension_numbers = #tpu.dot_dimension_numbers<[1], [0], [0], [1], [0, 0, 1, 1], [], []>} : vector<8x16xbf16>, vector<16x8xbf16>, vector<8x8xf32> -> vector<8x8xf32>
    %55 = tpu.reciprocal %52 {approx = true} : vector<8x1xf32> -> vector<8x1xf32>
    %56 = vector.broadcast %55 : vector<8x1xf32> to vector<8x8xf32>
    %57 = arith.mulf %54, %56 : vector<8x8xf32>
    %58 = arith.truncf %57 : vector<8x8xf32> to vector<8x8xbf16>
    %c0_27 = arith.constant 0 : index
    %c0_28 = arith.constant 0 : index
    %59 = vector.load %arg24[%c0_27, %c0_28] : memref<8x32xf32, #tpu.memory_space<vmem>>, vector<8x32xf32>
    %c8 = arith.constant 8 : index
    %c0_29 = arith.constant 0 : index
    %60 = vector.load %arg16[%c8, %c0_29] : memref<32x32xbf16, #tpu.memory_space<vmem>>, vector<8x32xbf16>
    %cst_30 = arith.constant dense<0.000000e+00> : vector<8x32xf32>
    %61 = tpu.matmul %58, %60, %cst_30 {dimension_numbers = #tpu.dot_dimension_numbers<[1], [0], [0], [1], [0, 0, 1, 1], [], []>} : vector<8x8xbf16>, vector<8x32xbf16>, vector<8x32xf32> -> vector<8x32xf32>
    %62 = arith.addf %59, %61 : vector<8x32xf32>
    %c0_31 = arith.constant 0 : index
    %c0_32 = arith.constant 0 : index
    %63 = vector.load %arg24[%c0_31, %c0_32] : memref<8x32xf32, #tpu.memory_space<vmem>>, vector<8x32xf32>
    tpu.vector_store %arg24[%c0_31, %c0_32], %62 {strides = array<i32>} : memref<8x32xf32, #tpu.memory_space<vmem>>, vector<8x32xf32>,
    %64 = vector.extract_strided_slice %13 {offsets = [0, 16], sizes = [8, 8], strides = [1, 1]} : vector<8x32xbf16> to vector<8x8xbf16>
    %65 = vector.extract_strided_slice %16 {offsets = [0, 16], sizes = [16, 8], strides = [1, 1]} : vector<16x32xbf16> to vector<16x8xbf16>
    %66 = vector.extract_strided_slice %19 {offsets = [0, 16], sizes = [16, 8], strides = [1, 1]} : vector<16x32xbf16> to vector<16x8xbf16>
    %cst_33 = arith.constant dense<0.000000e+00> : vector<8x16xf32>
    %67 = tpu.matmul %64, %65, %cst_33 {dimension_numbers = #tpu.dot_dimension_numbers<[1], [1], [0], [0], [0, 0, 1, 0], [], []>} : vector<8x8xbf16>, vector<16x8xbf16>, vector<8x16xf32> -> vector<8x16xf32>
    %cst_34 = arith.constant dense<0xFF800000> : vector<8xf32>
    %68 = vector.multi_reduction <maximumf>, %67, %cst_34 [1] : vector<8x16xf32> to vector<8xf32>
    %69 = vector.shape_cast %68 : vector<8xf32> to vector<8x1xf32>
    %70 = vector.broadcast %69 : vector<8x1xf32> to vector<8x16xf32>
    %71 = arith.subf %67, %70 : vector<8x16xf32>
    %72 = math.exp %71 : vector<8x16xf32>
    %cst_35 = arith.constant dense<0.000000e+00> : vector<8xf32>
    %73 = vector.multi_reduction <add>, %72, %cst_35 [1] : vector<8x16xf32> to vector<8xf32>
    %74 = vector.shape_cast %73 : vector<8xf32> to vector<8x1xf32>
    %75 = arith.truncf %72 : vector<8x16xf32> to vector<8x16xbf16>
    %cst_36 = arith.constant dense<0.000000e+00> : vector<8x8xf32>
    %76 = tpu.matmul %75, %66, %cst_36 {dimension_numbers = #tpu.dot_dimension_numbers<[1], [0], [0], [1], [0, 0, 1, 1], [], []>} : vector<8x16xbf16>, vector<16x8xbf16>, vector<8x8xf32> -> vector<8x8xf32>
    %77 = tpu.reciprocal %74 {approx = true} : vector<8x1xf32> -> vector<8x1xf32>
    %78 = vector.broadcast %77 : vector<8x1xf32> to vector<8x8xf32>
    %79 = arith.mulf %76, %78 : vector<8x8xf32>
    %80 = arith.truncf %79 : vector<8x8xf32> to vector<8x8xbf16>
    %c0_37 = arith.constant 0 : index
    %c0_38 = arith.constant 0 : index
    %81 = vector.load %arg24[%c0_37, %c0_38] : memref<8x32xf32, #tpu.memory_space<vmem>>, vector<8x32xf32>
    %c16 = arith.constant 16 : index
    %c0_39 = arith.constant 0 : index
    %82 = vector.load %arg16[%c16, %c0_39] : memref<32x32xbf16, #tpu.memory_space<vmem>>, vector<8x32xbf16>
    %cst_40 = arith.constant dense<0.000000e+00> : vector<8x32xf32>
    %83 = tpu.matmul %80, %82, %cst_40 {dimension_numbers = #tpu.dot_dimension_numbers<[1], [0], [0], [1], [0, 0, 1, 1], [], []>} : vector<8x8xbf16>, vector<8x32xbf16>, vector<8x32xf32> -> vector<8x32xf32>
    %84 = arith.addf %81, %83 : vector<8x32xf32>
    %c0_41 = arith.constant 0 : index
    %c0_42 = arith.constant 0 : index
    %85 = vector.load %arg24[%c0_41, %c0_42] : memref<8x32xf32, #tpu.memory_space<vmem>>, vector<8x32xf32>
    tpu.vector_store %arg24[%c0_41, %c0_42], %84 {strides = array<i32>} : memref<8x32xf32, #tpu.memory_space<vmem>>, vector<8x32xf32>,
    %86 = vector.extract_strided_slice %13 {offsets = [0, 24], sizes = [8, 8], strides = [1, 1]} : vector<8x32xbf16> to vector<8x8xbf16>
    %87 = vector.extract_strided_slice %16 {offsets = [0, 24], sizes = [16, 8], strides = [1, 1]} : vector<16x32xbf16> to vector<16x8xbf16>
    %88 = vector.extract_strided_slice %19 {offsets = [0, 24], sizes = [16, 8], strides = [1, 1]} : vector<16x32xbf16> to vector<16x8xbf16>
    %cst_43 = arith.constant dense<0.000000e+00> : vector<8x16xf32>
    %89 = tpu.matmul %86, %87, %cst_43 {dimension_numbers = #tpu.dot_dimension_numbers<[1], [1], [0], [0], [0, 0, 1, 0], [], []>} : vector<8x8xbf16>, vector<16x8xbf16>, vector<8x16xf32> -> vector<8x16xf32>
    %cst_44 = arith.constant dense<0xFF800000> : vector<8xf32>
    %90 = vector.multi_reduction <maximumf>, %89, %cst_44 [1] : vector<8x16xf32> to vector<8xf32>
    %91 = vector.shape_cast %90 : vector<8xf32> to vector<8x1xf32>
    %92 = vector.broadcast %91 : vector<8x1xf32> to vector<8x16xf32>
    %93 = arith.subf %89, %92 : vector<8x16xf32>
    %94 = math.exp %93 : vector<8x16xf32>
    %cst_45 = arith.constant dense<0.000000e+00> : vector<8xf32>
    %95 = vector.multi_reduction <add>, %94, %cst_45 [1] : vector<8x16xf32> to vector<8xf32>
    %96 = vector.shape_cast %95 : vector<8xf32> to vector<8x1xf32>
    %97 = arith.truncf %94 : vector<8x16xf32> to vector<8x16xbf16>
    %cst_46 = arith.constant dense<0.000000e+00> : vector<8x8xf32>
    %98 = tpu.matmul %97, %88, %cst_46 {dimension_numbers = #tpu.dot_dimension_numbers<[1], [0], [0], [1], [0, 0, 1, 1], [], []>} : vector<8x16xbf16>, vector<16x8xbf16>, vector<8x8xf32> -> vector<8x8xf32>
    %99 = tpu.reciprocal %96 {approx = true} : vector<8x1xf32> -> vector<8x1xf32>
    %100 = vector.broadcast %99 : vector<8x1xf32> to vector<8x8xf32>
    %101 = arith.mulf %98, %100 : vector<8x8xf32>
    %102 = arith.truncf %101 : vector<8x8xf32> to vector<8x8xbf16>
    %c0_47 = arith.constant 0 : index
    %c0_48 = arith.constant 0 : index
    %103 = vector.load %arg24[%c0_47, %c0_48] : memref<8x32xf32, #tpu.memory_space<vmem>>, vector<8x32xf32>
    %c24 = arith.constant 24 : index
    %c0_49 = arith.constant 0 : index
    %104 = vector.load %arg16[%c24, %c0_49] : memref<32x32xbf16, #tpu.memory_space<vmem>>, vector<8x32xbf16>
    %cst_50 = arith.constant dense<0.000000e+00> : vector<8x32xf32>
    %105 = tpu.matmul %102, %104, %cst_50 {dimension_numbers = #tpu.dot_dimension_numbers<[1], [0], [0], [1], [0, 0, 1, 1], [], []>} : vector<8x8xbf16>, vector<8x32xbf16>, vector<8x32xf32> -> vector<8x32xf32>
    %106 = arith.addf %103, %105 : vector<8x32xf32>
    %c0_51 = arith.constant 0 : index
    %c0_52 = arith.constant 0 : index
    %107 = vector.load %arg24[%c0_51, %c0_52] : memref<8x32xf32, #tpu.memory_space<vmem>>, vector<8x32xf32>
    tpu.vector_store %arg24[%c0_51, %c0_52], %106 {strides = array<i32>} : memref<8x32xf32, #tpu.memory_space<vmem>>, vector<8x32xf32>,
    %108 = arith.extui %1 : i1 to i32
    %c0_i32_53 = arith.constant 0 : i32
    %109 = arith.cmpi ne, %108, %c0_i32_53 : i32
    scf.if %109 {
      %c0_54 = arith.constant 0 : index
      %c0_55 = arith.constant 0 : index
      %110 = vector.load %arg24[%c0_54, %c0_55] : memref<8x32xf32, #tpu.memory_space<vmem>>, vector<8x32xf32>
      %c0_56 = arith.constant 0 : index
      %c0_57 = arith.constant 0 : index
      %111 = vector.load %arg17[%c0_56, %c0_57] : memref<1x32xf32, #tpu.memory_space<vmem>>, vector<1x32xf32>
      %112 = vector.broadcast %111 : vector<1x32xf32> to vector<8x32xf32>
      %113 = arith.addf %110, %112 : vector<8x32xf32>
      %c0_58 = arith.constant 0 : index
      %c0_59 = arith.constant 0 : index
      %c0_60 = arith.constant 0 : index
      %114 = vector.load %arg18[%c0_58, %c0_59, %c0_60] : memref<1x8x32xf32, #tpu.memory_space<vmem>>, vector<1x8x32xf32>
      %115 = vector.shape_cast %114 : vector<1x8x32xf32> to vector<8x32xf32>
      %116 = vector.shape_cast %113 : vector<8x32xf32> to vector<1x8x32xf32>
      tpu.vector_store %arg18[%c0_58, %c0_59, %c0_60], %116 {strides = array<i32>} : memref<1x8x32xf32, #tpu.memory_space<vmem>>, vector<1x8x32xf32>,
    } else {
    }
    return
  }
  func.func @transform_0(%arg0: i32, %arg1: i32, %arg2: i32) -> (i32, i32, i32) {
    %c0_i32 = arith.constant 0 : i32
    %c0_i32_0 = arith.constant 0 : i32
    return %arg0, %arg1, %c0_i32 : i32, i32, i32
  }
  func.func @transform_1(%arg0: i32, %arg1: i32, %arg2: i32) -> (i32, i32, i32) {
    %c0_i32 = arith.constant 0 : i32
    %c0_i32_0 = arith.constant 0 : i32
    %c0_i32_1 = arith.constant 0 : i32
    return %arg0, %c0_i32, %c0_i32_0 : i32, i32, i32
  }
  func.func @transform_2(%arg0: i32, %arg1: i32, %arg2: i32) -> (i32, i32, i32) {
    %c0_i32 = arith.constant 0 : i32
    %c0_i32_0 = arith.constant 0 : i32
    return %arg0, %arg1, %c0_i32 : i32, i32, i32
  }
  func.func @transform_3(%arg0: i32, %arg1: i32, %arg2: i32) -> (i32, i32, i32) {
    %c0_i32 = arith.constant 0 : i32
    %c0_i32_0 = arith.constant 0 : i32
    %c0_i32_1 = arith.constant 0 : i32
    return %arg0, %c0_i32, %c0_i32_0 : i32, i32, i32
  }
  func.func @transform_4(%arg0: i32, %arg1: i32, %arg2: i32) -> (i32, i32) {
    %c0_i32 = arith.constant 0 : i32
    %c0_i32_0 = arith.constant 0 : i32
    %c0_i32_1 = arith.constant 0 : i32
    return %c0_i32, %c0_i32_0 : i32, i32
  }
  func.func @transform_5(%arg0: i32, %arg1: i32, %arg2: i32) -> (i32, i32) {
    %c0_i32 = arith.constant 0 : i32
    %c0_i32_0 = arith.constant 0 : i32
    %c0_i32_1 = arith.constant 0 : i32
    return %c0_i32, %c0_i32_0 : i32, i32
  }
  func.func @transform_6(%arg0: i32, %arg1: i32, %arg2: i32) -> (i32, i32) {
    %c0_i32 = arith.constant 0 : i32
    %c0_i32_0 = arith.constant 0 : i32
    %c0_i32_1 = arith.constant 0 : i32
    return %c0_i32, %c0_i32_0 : i32, i32
  }
  func.func @transform_7(%arg0: i32, %arg1: i32, %arg2: i32) -> (i32, i32) {
    %c0_i32 = arith.constant 0 : i32
    %c0_i32_0 = arith.constant 0 : i32
    %c0_i32_1 = arith.constant 0 : i32
    return %c0_i32, %c0_i32_0 : i32, i32
  }
  func.func @transform_8(%arg0: i32, %arg1: i32, %arg2: i32) -> (i32, i32) {
    %c0_i32 = arith.constant 0 : i32
    %c0_i32_0 = arith.constant 0 : i32
    %c0_i32_1 = arith.constant 0 : i32
    return %c0_i32, %c0_i32_0 : i32, i32
  }
  func.func @transform_9(%arg0: i32, %arg1: i32, %arg2: i32) -> (i32, i32) {
    %c0_i32 = arith.constant 0 : i32
    %c0_i32_0 = arith.constant 0 : i32
    %c0_i32_1 = arith.constant 0 : i32
    return %c0_i32, %c0_i32_0 : i32, i32
  }
  func.func @transform_10(%arg0: i32, %arg1: i32, %arg2: i32) -> (i32, i32) {
    %c0_i32 = arith.constant 0 : i32
    %c0_i32_0 = arith.constant 0 : i32
    return %c0_i32, %arg2 : i32, i32
  }
  func.func @transform_11(%arg0: i32, %arg1: i32, %arg2: i32) -> (i32, i32) {
    %c0_i32 = arith.constant 0 : i32
    %c0_i32_0 = arith.constant 0 : i32
    return %c0_i32, %arg2 : i32, i32
  }
  func.func @transform_12(%arg0: i32, %arg1: i32, %arg2: i32) -> (i32, i32) {
    %c0_i32 = arith.constant 0 : i32
    %c0_i32_0 = arith.constant 0 : i32
    return %c0_i32, %arg2 : i32, i32
  }
  func.func @transform_13(%arg0: i32, %arg1: i32, %arg2: i32) -> (i32, i32) {
    %c0_i32 = arith.constant 0 : i32
    %c0_i32_0 = arith.constant 0 : i32
    return %arg2, %c0_i32 : i32, i32
  }
  func.func @transform_14(%arg0: i32, %arg1: i32, %arg2: i32) -> (i32, i32) {
    %c0_i32 = arith.constant 0 : i32
    %c0_i32_0 = arith.constant 0 : i32
    %c0_i32_1 = arith.constant 0 : i32
    return %c0_i32, %c0_i32_0 : i32, i32
  }
  func.func @transform_15(%arg0: i32, %arg1: i32, %arg2: i32) -> (i32, i32, i32) {
    %c0_i32 = arith.constant 0 : i32
    %c0_i32_0 = arith.constant 0 : i32
    return %arg0, %arg1, %c0_i32 : i32, i32, i32
  }
}

</mosaic_0001>

<bundles_post_ra>
// kernel: tpu_custom_call.1
= control target key start
LH: loop header
LB: loop body
LE: loop exit
PB: predicated region body
PF: predicated region fallthrough
CT: control target
= control target key end

     0   :  { %s3614_s0 = inlined_call_operand.hbm [shape: bf16[2,8,32], index: 0, kind: input, shape index: {}]   ;;  %s3615_s1 = inlined_call_operand.hbm [shape: bf16[2,16,32], index: 1, kind: input, shape index: {}]   ;;  %s3616_s2 = inlined_call_operand.hbm [shape: bf16[2,8,32], index: 2, kind: input, shape index: {}]   ;;  %s3617_s3 = inlined_call_operand.hbm [shape: bf16[2,16,32], index: 3, kind: input, shape index: {}]   ;;  %s3618_s4 = inlined_call_operand.vmem [shape: f32[1,32], index: 4, kind: input, shape index: {}]   ;;  %s3619_s5 = inlined_call_operand.hbm [shape: f32[1,32], index: 5, kind: input, shape index: {}]   ;;  %s3620_s6 = inlined_call_operand.hbm [shape: f32[1,32], index: 6, kind: input, shape index: {}]   ;;  %s3621_s7 = inlined_call_operand.hbm [shape: f32[1,32], index: 7, kind: input, shape index: {}]   ;;  %s3622_s8 = inlined_call_operand.hbm [shape: f32[1,32], index: 8, kind: input, shape index: {}]   ;;  %s3623_s9 = inlined_call_operand.hbm [shape: f32[1,32], index: 9, kind: input, shape index: {}]   ;;  %s3624_s10 = inlined_call_operand.vmem [shape: bf16[32,32], index: 10, kind: input, shape index: {}]   ;;  %s3625_s11 = inlined_call_operand.vmem [shape: bf16[32,32], index: 11, kind: input, shape index: {}]   ;;  %s3626_s12 = inlined_call_operand.hbm [shape: bf16[32,32], index: 12, kind: input, shape index: {}]   ;;  %s3627_s13 = inlined_call_operand.vmem [shape: bf16[32,32], index: 13, kind: input, shape index: {}]   ;;  %s3628_s14 = inlined_call_operand.vmem [shape: f32[1,32], index: 14, kind: input, shape index: {}]   ;;  %s3629_s15 = inlined_call_operand.hbm [shape: f32[2,8,32], index: 15, kind: output, shape index: {}]  }
   0x1   :  { %3662 = sst [smem:[#allocation45_spill]] %s3615_s1 }
   0x2   :  { %3663 = sst [smem:[#allocation46_spill]] %s3618_s4 }
   0x3   :  { %3664 = sst [smem:[#allocation47_spill]] %s3619_s5 }
   0x4   :  { %3665 = sst [smem:[#allocation48_spill]] %s3620_s6 }
   0x5   :  { %3666 = sst [smem:[#allocation49_spill]] %s3622_s8 }
   0x6   :  { %3667 = sst [smem:[#allocation50_spill]] %s3624_s10 }
   0x7   :  { %3668 = sst [smem:[#allocation51_spill]] %s3625_s11 }
   0x8   :  { %3669 = sst [smem:[#allocation52_spill]] %s3627_s13 }
   0x9   :  { %3670 = sst [smem:[#allocation53_spill]] %s3628_s14 }
   0xa   :  { %3671 = sst [smem:[#allocation54_spill]] %s3629_s15 }
   0xb   :  { %20 = vsyncpa [#allocation9], 0 }
   0xc   :  { %22 = vsyncpa [#allocation9 + $0x1], 0 }
   0xd   :  { %23 = vsyncpa [#allocation12], 0 }
   0xe   :  { %25 = vsyncpa [#allocation12 + $0x1], 0 }
   0xf   :  { %26 = vsyncpa [#allocation15], 0 }
  0x10   :  { %28 = vsyncpa [#allocation15 + $0x1], 0 }
  0x11   :  { %29 = vsyncpa [#allocation18], 0 }
  0x12   :  { %30 = vsyncpa [#allocation21], 0 }
  0x13   :  { %31 = vsyncpa [#allocation24], 0 }
  0x14   :  { %32 = vsyncpa [#allocation10], 0 }
  0x15   :  { %34 = vsyncpa [#allocation10 + $0x1], 0  ;;  %s2959_s18 = smov 0   ;;  %s2961_s19 = smov 0  }
  0x16   :  { %s2963_s20 = smov 0   ;;  %s2965_s21 = smov 0  }
  0x17   :  { %s2967_s22 = smov 0   ;;  %s2969_s23 = smov 0  }
  0x18 LB: > { %3672 = sst [smem:[#allocation34_spill]] %s2839_s18  ;;  %s2990_s24 = sadd.s32 4294967295, %s2859_s23   ;;  %s2859_s23 = sphi %s2969_s23, %s40_s23   ;;  %s2855_s22 = sphi %s2967_s22, %s3740_s22   ;;  %s2851_s21 = sphi %s2965_s21, %s3739_s21   ;;  %s2847_s20 = sphi %s2963_s20, %s3737_s20   ;;  %s2843_s19 = sphi %s2961_s19, %s3736_s19   ;;  %s2839_s18 = sphi %s2959_s18, %s3735_s18  }
  0x19   : > { %3673 = sst [smem:[#allocation35_spill]] %s2843_s19  ;;  %p2084_p0 = scmp.ge.s32.totalorder %s2859_s23, 1 }
  0x1a   : > { %3674 = sst [smem:[#allocation36_spill]] %s2847_s20  ;;  %p3633_p1 = scmp.eq.s32.totalorder %s2990_s24, 0 }
  0x1b   : > { %3675 = sst [smem:[#allocation37_spill]] %s2851_s21  ;;  %p451_p2 = scmp.lt.s32.totalorder %s2859_s23, 3 }
  0x1c   : > { %3676 = sst [smem:[#allocation38_spill]] %s2990_s24  ;;  %s2861_s26 = smov [#allocation16]  }
  0x1d   : > { %p2995_p3 = pnand %p2084_p0, %p451_p2  ;;  %s467_s27 = sshll.u32 %s2861_s26, 4  ;;  %s468_s27 = int_to_ptr.vmem [resolvable:$true] %s467_s27 }
  0x1e   : > { %s2862_s28 = smov [#allocation17]   ;;  %s2863_s16 = smov [#allocation20]  }
  0x1f   : > { %s3677_s25 = scalar_select %p2995_p3, 1, 0 }
  0x20   : > { %p2322_p5 = pneg %p2995_p3  ;;  %s478_s29 = sshll.u32 %s2862_s28, 4  ;;  %s3008_s29 = int_to_ptr.vmem [resolvable:$true] %s478_s29 }
  0x21   : > { %3678 = sst [smem:[#allocation39_spill]] %s3677_s25  ;;  %s500_s17 = sshll.u32 %s2863_s16, 4  ;;  %s3010_s17 = int_to_ptr.vmem [resolvable:$true] %s500_s17 }
  0x22   : > { %p3004_p6 = pnand %p2322_p5, %p3633_p1  ;;  %s3680_s5 = sld [smem:[#allocation47_spill]] }
  0x24   : > { %s3679_s30 = scalar_select %p3004_p6, 1, 0 }
  0x25   : > { %p3020_p8 = pneg %p3004_p6 }
  0x27   : > { %s3681_s28 = scalar_select %p3020_p8, 1, 0 }
  0x28   : > { %s2465_s14 = scalar_lea.hbm %s3680_s5, 16 }
  0x29   : > { %p2466_p7 = scmp.ne.s32.totalorder %s3680_s5, %s2465_s14  ;;  %p2472_p11 = scmp.lt.u32.totalorder %s2465_s14, %s3680_s5 }
  0x2b   : > { %p2468_p9 = pnand %p3020_p8, %p2466_p7 }
  0x2d   : > { %p2469_p10 = pneg %p2468_p9 }
  0x2f   : > { %p2474_p12 = pnand %p2472_p11, %p2469_p10 }
  0x31   : > { %2477 = shalt.err (!%p2474_p12)
}
  0x32   : > { %s2478_s15 = scalar_lea.vmem %s468_s27, 16  ;;  %s2485_s13 = scalar_lea.vmem %s468_s27, 32 }
  0x33   : > { %p2479_p13 = scmp.ne.s32.totalorder %s468_s27, %s2478_s15  ;;  %p2486_p5 = scmp.lt.s32.totalorder %s468_s27, %s468_s27 }
  0x34   : > { %p2487_p4 = scmp.lt.s32.totalorder %s2485_s13, %s2478_s15 }
  0x35   : > { %p2481_p0 = pnand %p2479_p13, %p3020_p8 }
  0x36   : > { %p2488_p1 = por %p2487_p4, %p2486_p5 }
  0x37   : > { %p2482_p2 = pneg %p2481_p0 }
  0x39   : > { %p2489_p3 = pnand %p2488_p1, %p2482_p2 }
  0x3b   : > { %2492 = shalt.err (!%p2489_p3)
}
  0x3c   : > { %2325 = dma.hbm_to_vmem [thread:$0]  (!%p3004_p6), %s3680_s5, 16, %s468_s27, [#allocation15]  }
  0x3d   : > { %s3682_s6 = sld [smem:[#allocation48_spill]] }
  0x43   : > { %s2493_s16 = scalar_lea.hbm %s3682_s6, 16 }
  0x44   : > { %p2494_p7 = scmp.ne.s32.totalorder %s3682_s6, %s2493_s16  ;;  %p2500_p1 = scmp.lt.u32.totalorder %s2493_s16, %s3682_s6 }
  0x46   : > { %p2496_p9 = pnand %p2494_p7, %p3020_p8 }
  0x48   : > { %p2497_p4 = pneg %p2496_p9 }
  0x4a   : > { %p2502_p3 = pnand %p2500_p1, %p2497_p4 }
  0x4c   : > { %2505 = shalt.err (!%p2502_p3)
}
  0x4d   : > { %s2506_s27 = scalar_lea.vmem %s3008_s29, 16  ;;  %s2513_s4 = scalar_lea.vmem %s3008_s29, 32 }
  0x4e   : > { %p2507_p10 = scmp.ne.s32.totalorder %s3008_s29, %s2506_s27  ;;  %p2514_p13 = scmp.lt.s32.totalorder %s3008_s29, %s3008_s29 }
  0x4f   : > { %p2515_p0 = scmp.lt.s32.totalorder %s2513_s4, %s2506_s27 }
  0x50   : > { %p2509_p11 = pnand %p2507_p10, %p3020_p8 }
  0x51   : > { %p2516_p2 = por %p2515_p0, %p2514_p13 }
  0x52   : > { %p2510_p12 = pneg %p2509_p11 }
  0x54   : > { %p2517_p5 = pnand %p2516_p2, %p2510_p12 }
  0x56   : > { %2520 = shalt.err (!%p2517_p5)
}
  0x57   : > { %2328 = dma.hbm_to_vmem [thread:$0]  (!%p3004_p6), %s3682_s6, 16, %s3008_s29, [#allocation18]  }
  0x58   : > { %s3683_s8 = sld [smem:[#allocation49_spill]] }
  0x5e   : > { %s2521_s14 = scalar_lea.hbm %s3683_s8, 16 }
  0x5f   : > { %p2522_p7 = scmp.ne.s32.totalorder %s3683_s8, %s2521_s14  ;;  %p2528_p1 = scmp.lt.u32.totalorder %s2521_s14, %s3683_s8 }
  0x61   : > { %p2524_p9 = pnand %p2522_p7, %p3020_p8 }
  0x63   : > { %p2525_p4 = pneg %p2524_p9 }
  0x65   : > { %p2530_p3 = pnand %p2528_p1, %p2525_p4 }
  0x67   : > { %2533 = shalt.err (!%p2530_p3)
}
  0x68   : > { %s2534_s29 = scalar_lea.vmem %s3010_s17, 16  ;;  %s2541_s4 = scalar_lea.vmem %s3010_s17, 32 }
  0x69   : > { %p2535_p10 = scmp.ne.s32.totalorder %s3010_s17, %s2534_s29  ;;  %p2542_p13 = scmp.lt.s32.totalorder %s3010_s17, %s3010_s17 }
  0x6a   : > { %p2543_p0 = scmp.lt.s32.totalorder %s2541_s4, %s2534_s29 }
  0x6b   : > { %p2537_p11 = pnand %p2535_p10, %p3020_p8 }
  0x6c   : > { %p2544_p2 = por %p2543_p0, %p2542_p13 }
  0x6d   : > { %p2538_p12 = pneg %p2537_p11 }
  0x6f   : > { %p2545_p5 = pnand %p2544_p2, %p2538_p12 }
  0x71   : > { %2548 = shalt.err (!%p2545_p5)
}
  0x72   : > { %2334 = dma.hbm_to_vmem [thread:$0]  (!%p3004_p6), %s3683_s8, 16, %s3010_s17, [#allocation21]  }
  0x73   : > { %s2083_s26 = sadd.s32 4294967294, %s2859_s23   ;;  %s59_s10 = sadd.s32 1, %s2855_s22 }
  0x74   : > { %s68_s14 = sadd.s32 1, %s2847_s20  ;;  %p61_p7 = scmp.ge.s32.totalorder %s59_s10, 2 }
  0x75   : > { %p75_p9 = scmp.ne.s32.totalorder %s2847_s20, %s2843_s19  ;;  %p76_p4 = scmp.eq.s32.totalorder %s2859_s23, 0 }
  0x76   : > { %p81_p1 = scmp.ne.s32.totalorder %s2843_s19, %s2839_s18  ;;  %s3742_s10 = smov (%p61_p7, %s59_s10), 0 }
  0x77   : > { %3684 = sst [smem:[#allocation40_spill]] %s3742_s10  ;;  %p3094_p3 = por %p76_p4, %p75_p9 }
  0x78   : > { %p3686_p10 = scmp.eq.s32.totalorder %s2990_s24, 0  ;;  %s63_s15 = ssub.s32 %s2855_s22, %s3742_s10 }
  0x79   : > { %p438_p12 = scmp.eq.s32.totalorder %s2990_s24, 1  ;;  %p66_p13 = scmp.eq.s32.totalorder %s63_s15, 0 }
  0x7a   : > { %p3100_p11 = por %p3686_p10, %p81_p1  ;;  %p444_p0 = scmp.eq.s32.totalorder %s2083_s26, 1 }
  0x7b   : > { %p3107_p2 = por %p438_p12, %p75_p9  ;;  %p2364_p7 = scmp.lt.s32.totalorder %s2859_s23, 2 }
  0x7c   : > { %s3687_s17 = scalar_select %p3100_p11, 1, 0 }
  0x7d   : > { %s3689_s13 = scalar_select %p3107_p2, 1, 0 }
  0x7e   : > { %3688 = sst [smem:[#allocation41_spill]] %s3687_s17  ;;  %p3114_p5 = por %p444_p0, %p81_p1 }
  0x7f   : > { %3690 = sst [smem:[#allocation42_spill]] %s3689_s13  ;;  %s3120_s4 = sand.u32 1, %s2847_s20  }
  0x80   : > { %s3112_s27 = scalar_select %p66_p13, %s2847_s20, %s68_s14  }
  0x81   : > { %s3692_s29 = scalar_select %p3114_p5, 1, 0 }
  0x82   : > { %3691 = sst [smem:[#allocation43_spill]] %s3112_s27  ;;  %s3638_s21 = sshll.u32 %s3120_s4, 3 }
  0x83   : > { %3693 = sst [smem:[#allocation44_spill]] %s3692_s29  ;;  %p3126_p4 = pnand %p2364_p7, %p3094_p3 }
  0x84   : > { %s3639_s15 = sshll.u32 %s2855_s22, 7  ;;  %s3695_s1 = sld [smem:[#allocation45_spill]] }
  0x85   : > { %s3694_s26 = scalar_select %p3126_p4, 1, 0 }
  0x86   : > { %s586_s11 = scalar_lea.vmem [#allocation11], %s3638_s21  ;;  %s3696_s16 = sand.u32 1, %s2859_s23  }
  0x87   : > { %s593_s8 = sshll.u32 %s586_s11, 4  ;;  %s3144_s10 = scalar_lea.sflag [#allocation12], %s3696_s16  ;;  %s3140_s8 = int_to_ptr.vmem [resolvable:$true] %s593_s8 }
  0x88   : > { %p3150_p1 = pneg %p3126_p4 }
  0x8a   : > { %s3136_s6 = scalar_lea.hbm %s3695_s1, %s3639_s15  ;;  %s2554_s11 = scalar_lea.hbm %s3695_s1, 256 }
  0x8b   : > { %s2549_s27 = scalar_lea.hbm %s3136_s6, 128  ;;  %p2555_p12 = scmp.lt.u32.totalorder %s3136_s6, %s3695_s1 }
  0x8c   : > { %p2550_p9 = scmp.ne.s32.totalorder %s3136_s6, %s2549_s27  ;;  %p2556_p13 = scmp.lt.u32.totalorder %s2554_s11, %s2549_s27 }
  0x8d   : > { %s3697_s20 = scalar_select %p3150_p1, 1, 0 }
  0x8e   : > { %p2552_p3 = pnand %p3150_p1, %p2550_p9  ;;  %p2557_p0 = por %p2556_p13, %p2555_p12 }
  0x8f   : > { %p2558_p7 = scmp.lt.u32.totalorder %s2549_s27, %s3136_s6 }
  0x90   : > { %p2553_p10 = pneg %p2552_p3 }
  0x91   : > { %p2559_p5 = por %p2558_p7, %p2557_p0 }
  0x93   : > { %p2560_p2 = pnand %p2559_p5, %p2553_p10 }
  0x95   : > { %2563 = shalt.err (!%p2560_p2)
}
  0x96   : > { %s2564_s16 = scalar_lea.vmem %s3140_s8, 128  ;;  %s2864_s5 = smov [#allocation11]  }
  0x97   : > { %p2565_p9 = scmp.ne.s32.totalorder %s3140_s8, %s2564_s16  ;;  %s2569_s14 = sshll.u32 %s2864_s5, 4  ;;  %s2570_s14 = int_to_ptr.vmem [resolvable:$false] %s2569_s14 }
  0x98   : > { %s2571_s21 = scalar_lea.vmem %s2570_s14, 256  ;;  %p2572_p6 = scmp.lt.s32.totalorder %s3140_s8, %s2570_s14 }
  0x99   : > { %p2567_p3 = pnand %p2565_p9, %p3150_p1  ;;  %p2573_p8 = scmp.lt.s32.totalorder %s2571_s21, %s2564_s16 }
  0x9b   : > { %p2568_p11 = pneg %p2567_p3  ;;  %p2574_p12 = por %p2573_p8, %p2572_p6 }
  0x9d   : > { %p2575_p13 = pnand %p2574_p12, %p2568_p11 }
  0x9f   : > { %2578 = shalt.err (!%p2575_p13)
}
  0xa0   : > { %s3656_s27 = smov 64   ;;  %s2866_s15 = smov 4  }
  0xa1   : > { %2347 = dma.hbm_to_vmem [thread:$0]  (!%p3126_p4), %s3136_s6, 128, %s3140_s8, %s3144_s10, %s3656_s27, %s3656_s27, %s2866_s15  }
  0xa2   : > { %s3698_s11 = sshll.u32 %s2855_s22, 7  ;;  %s3699_s21 = sshll.u32 %s3120_s4, 3 }
  0xa3   : > { %s3182_s14 = scalar_lea.hbm %s3617_s3, %s3698_s11  ;;  %s626_s1 = scalar_lea.vmem [#allocation14], %s3699_s21 }
  0xa4   : > { %s633_s29 = sshll.u32 %s626_s1, 4  ;;  %s2867_s18 = smov [#allocation19]   ;;  %s3186_s29 = int_to_ptr.vmem [resolvable:$true] %s633_s29 }
  0xa5   : > { %s489_s13 = sshll.u32 %s2867_s18, 4  ;;  %s2868_s24 = smov [#allocation22]   ;;  %s490_s13 = int_to_ptr.vmem [resolvable:$true] %s489_s13 }
  0xa6   : > { %s511_s17 = sshll.u32 %s2868_s24, 4  ;;  %s2579_s6 = scalar_lea.hbm %s3621_s7, 16  ;;  %s512_s17 = int_to_ptr.vmem [resolvable:$true] %s511_s17 }
  0xa7   : > { %p2580_p6 = scmp.ne.s32.totalorder %s3621_s7, %s2579_s6  ;;  %p3700_p8 = scmp.ne.s32.totalorder %s3681_s28, 0 }
  0xa8   : > { %p2586_p5 = scmp.lt.u32.totalorder %s2579_s6, %s3621_s7 }
  0xa9   : > { %p2582_p11 = pnand %p2580_p6, %p3700_p8 }
  0xab   : > { %p2583_p2 = pneg %p2582_p11 }
  0xad   : > { %p2588_p10 = pnand %p2586_p5, %p2583_p2 }
  0xaf   : > { %2591 = shalt.err (!%p2588_p10)
}
  0xb0   : > { %s2592_s18 = scalar_lea.vmem %s490_s13, 16  ;;  %s2599_s19 = scalar_lea.vmem %s490_s13, 32 }
  0xb1   : > { %p2593_p0 = scmp.ne.s32.totalorder %s490_s13, %s2592_s18  ;;  %p2600_p3 = scmp.lt.s32.totalorder %s490_s13, %s490_s13 }
  0xb2   : > { %p2601_p12 = scmp.lt.s32.totalorder %s2599_s19, %s2592_s18 }
  0xb3   : > { %p2595_p7 = pnand %p2593_p0, %p3700_p8 }
  0xb4   : > { %p2602_p13 = por %p2601_p12, %p2600_p3 }
  0xb5   : > { %p2596_p9 = pneg %p2595_p7 }
  0xb7   : > { %p2603_p4 = pnand %p2602_p13, %p2596_p9 }
  0xb9   : > { %2606 = shalt.err (!%p2603_p4)
}
  0xba   : > { %p3701_p6 = scmp.ne.s32.totalorder %s3679_s30, 0  ;;  %s2607_s16 = scalar_lea.hbm %s3623_s9, 16 }
  0xbb   : > { %p2608_p11 = scmp.ne.s32.totalorder %s3623_s9, %s2607_s16  ;;  %p2614_p4 = scmp.lt.u32.totalorder %s2607_s16, %s3623_s9 }
  0xbc   : > { %2331 = dma.hbm_to_vmem [thread:$0]  (!%p3701_p6), %s3621_s7, 16, %s490_s13, [#allocation18]  }
  0xbd   : > { %p2610_p2 = pnand %p2608_p11, %p3700_p8 }
  0xbf   : > { %p2611_p5 = pneg %p2610_p2 }
  0xc1   : > { %p2616_p10 = pnand %p2614_p4, %p2611_p5 }
  0xc3   : > { %2619 = shalt.err (!%p2616_p10)
}
  0xc4   : > { %s2620_s1 = scalar_lea.vmem %s512_s17, 16  ;;  %s2627_s13 = scalar_lea.vmem %s512_s17, 32 }
  0xc5   : > { %p2621_p0 = scmp.ne.s32.totalorder %s512_s17, %s2620_s1  ;;  %p2628_p3 = scmp.lt.s32.totalorder %s512_s17, %s512_s17 }
  0xc6   : > { %p2629_p12 = scmp.lt.s32.totalorder %s2627_s13, %s2620_s1 }
  0xc7   : > { %p2623_p7 = pnand %p2621_p0, %p3700_p8 }
  0xc8   : > { %p2630_p13 = por %p2629_p12, %p2628_p3 }
  0xc9   : > { %p2624_p9 = pneg %p2623_p7 }
  0xcb   : > { %p2631_p1 = pnand %p2630_p13, %p2624_p9 }
  0xcd   : > { %2634 = shalt.err (!%p2631_p1)
}
  0xce   : > { %2337 = dma.hbm_to_vmem [thread:$0]  (!%p3701_p6), %s3623_s9, 16, %s512_s17, [#allocation21]  }
  0xcf   : > { %s2869_s24 = smov [#allocation23]   ;;  %s2095_s27 = sshll.u32 %s3120_s4, 2 }
  0xd0   : > { %s537_s25 = sshll.u32 %s2869_s24, 4  ;;  %s2635_s21 = scalar_lea.hbm %s3626_s12, 256  ;;  %s538_s25 = int_to_ptr.vmem [resolvable:$true] %s537_s25 }
  0xd1   : > { %p2636_p1 = scmp.ne.s32.totalorder %s3626_s12, %s2635_s21  ;;  %p2642_p5 = scmp.lt.u32.totalorder %s2635_s21, %s3626_s12 }
  0xd3   : > { %p2638_p11 = pnand %p2636_p1, %p3700_p8 }
  0xd5   : > { %p2639_p2 = pneg %p2638_p11 }
  0xd7   : > { %p2644_p4 = pnand %p2642_p5, %p2639_p2 }
  0xd9   : > { %2647 = shalt.err (!%p2644_p4)
}
  0xda   : > { %s2648_s17 = scalar_lea.vmem %s538_s25, 256  ;;  %p2656_p9 = scmp.lt.s32.totalorder %s538_s25, %s538_s25 }
  0xdb   : > { %p2649_p10 = scmp.ne.s32.totalorder %s538_s25, %s2648_s17  ;;  %p2657_p3 = scmp.lt.s32.totalorder %s2648_s17, %s2648_s17 }
  0xdd   : > { %p2651_p0 = pnand %p2649_p10, %p3700_p8  ;;  %p2658_p12 = por %p2657_p3, %p2656_p9 }
  0xdf   : > { %p2652_p7 = pneg %p2651_p0 }
  0xe1   : > { %p2659_p13 = pnand %p2658_p12, %p2652_p7 }
  0xe3   : > { %2662 = shalt.err (!%p2659_p13)
}
  0xe4   : > { %s3702_s13 = smov 64   ;;  %s2096_s28 = sshll.u32 %s2855_s22, 6 }
  0xe5   : > { %2340 = dma.hbm_to_vmem [thread:$0]  (!%p3701_p6), %s3626_s12, 256, %s538_s25, [#allocation24], %s3702_s13, %s3702_s13, %s2866_s15  }
  0xe6   : > { %s3252_s16 = scalar_lea.hbm %s3614_s0, %s2096_s28  ;;  %s567_s30 = scalar_lea.vmem [#allocation8], %s2095_s27 }
  0xe7   : > { %s575_s21 = sshll.u32 %s567_s30, 4  ;;  %s564_s6 = scalar_lea.sflag [#allocation9], %s3120_s4  ;;  %s576_s21 = int_to_ptr.vmem [resolvable:$true] %s575_s21 }
  0xe8   : > { %s2663_s8 = scalar_lea.hbm %s3252_s16, 64  ;;  %p3703_p1 = scmp.ne.s32.totalorder %s3697_s20, 0 }
  0xe9   : > { %p2664_p8 = scmp.ne.s32.totalorder %s3252_s16, %s2663_s8  ;;  %s2668_s1 = scalar_lea.hbm %s3614_s0, 128 }
  0xea   : > { %p2669_p2 = scmp.lt.u32.totalorder %s3252_s16, %s3614_s0  ;;  %p2670_p5 = scmp.lt.u32.totalorder %s2668_s1, %s2663_s8 }
  0xeb   : > { %p2666_p6 = pnand %p2664_p8, %p3703_p1  ;;  %p2672_p10 = scmp.lt.u32.totalorder %s2663_s8, %s3252_s16 }
  0xec   : > { %p2671_p4 = por %p2670_p5, %p2669_p2 }
  0xed   : > { %p2667_p11 = pneg %p2666_p6 }
  0xee   : > { %p2673_p0 = por %p2672_p10, %p2671_p4 }
  0xf0   : > { %p2674_p7 = pnand %p2673_p0, %p2667_p11 }
  0xf2   : > { %2677 = shalt.err (!%p2674_p7)
}
  0xf3   : > { %s2678_s19 = scalar_lea.vmem %s576_s21, 64  ;;  %s2870_s24 = smov [#allocation8]  }
  0xf4   : > { %p2679_p9 = scmp.ne.s32.totalorder %s576_s21, %s2678_s19  ;;  %s2683_s5 = sshll.u32 %s2870_s24, 4  ;;  %s2684_s5 = int_to_ptr.vmem [resolvable:$false] %s2683_s5 }
  0xf5   : > { %s2685_s30 = scalar_lea.vmem %s2684_s5, 128  ;;  %p2686_p13 = scmp.lt.s32.totalorder %s576_s21, %s2684_s5 }
  0xf6   : > { %p2681_p3 = pnand %p2679_p9, %p3703_p1  ;;  %p2687_p8 = scmp.lt.s32.totalorder %s2685_s30, %s2678_s19 }
  0xf8   : > { %p2682_p12 = pneg %p2681_p3  ;;  %p2688_p6 = por %p2687_p8, %p2686_p13 }
  0xfa   : > { %p2689_p2 = pnand %p2688_p6, %p2682_p12 }
  0xfc   : > { %2692 = shalt.err (!%p2689_p2)
}
  0xfd   : > { %p3704_p5 = scmp.ne.s32.totalorder %s3694_s26, 0  ;;  %s3279_s11 = scalar_lea.hbm %s3616_s2, %s2096_s28 }
  0xfe   : > { %s607_s1 = scalar_lea.vmem [#allocation13], %s2095_s27  ;;  %s2693_s18 = scalar_lea.hbm %s3279_s11, 64 }
  0xff   : > { %2344 = dma.hbm_to_vmem [thread:$0]  (!%p3704_p5), %s3252_s16, 64, %s576_s21, %s564_s6  }
 0x100   : > { %s615_s17 = sshll.u32 %s607_s1, 4  ;;  %p2694_p11 = scmp.ne.s32.totalorder %s3279_s11, %s2693_s18  ;;  %s616_s17 = int_to_ptr.vmem [resolvable:$true] %s615_s17 }
 0x101   : > { %s2698_s6 = scalar_lea.hbm %s3616_s2, 128  ;;  %p2699_p0 = scmp.lt.u32.totalorder %s3279_s11, %s3616_s2 }
 0x102   : > { %p2696_p4 = pnand %p2694_p11, %p3703_p1  ;;  %p2700_p7 = scmp.lt.u32.totalorder %s2698_s6, %s2693_s18 }
 0x103   : > { %p2702_p3 = scmp.lt.u32.totalorder %s2693_s18, %s3279_s11 }
 0x104   : > { %p2697_p10 = pneg %p2696_p4  ;;  %p2701_p9 = por %p2700_p7, %p2699_p0 }
 0x106   : > { %p2703_p12 = por %p2702_p3, %p2701_p9 }
 0x108   : > { %p2704_p13 = pnand %p2703_p12, %p2697_p10 }
 0x10a   : > { %2707 = shalt.err (!%p2704_p13)
}
 0x10b   : > { %s2708_s4 = scalar_lea.vmem %s616_s17, 64  ;;  %s2871_s27 = smov [#allocation13]  }
 0x10c   : > { %p2709_p8 = scmp.ne.s32.totalorder %s616_s17, %s2708_s4  ;;  %s2713_s24 = sshll.u32 %s2871_s27, 4  ;;  %s2714_s24 = int_to_ptr.vmem [resolvable:$false] %s2713_s24 }
 0x10d   : > { %s2715_s5 = scalar_lea.vmem %s2714_s24, 128  ;;  %p2716_p11 = scmp.lt.s32.totalorder %s616_s17, %s2714_s24 }
 0x10e   : > { %p2711_p6 = pnand %p2709_p8, %p3703_p1  ;;  %p2717_p4 = scmp.lt.s32.totalorder %s2715_s5, %s2708_s4 }
 0x110   : > { %p2712_p2 = pneg %p2711_p6  ;;  %p2718_p5 = por %p2717_p4, %p2716_p11 }
 0x112   : > { %p2719_p0 = pnand %p2718_p5, %p2712_p2 }
 0x114   : > { %2722 = shalt.err (!%p2719_p0)
}
 0x115   : > { %p3705_p7 = scmp.ne.s32.totalorder %s3694_s26, 0  ;;  %s3706_s30 = sand.u32 1, %s2859_s23  }
 0x116   : > { %s3303_s8 = scalar_lea.sflag [#allocation15], %s3706_s30  ;;  %s2723_s25 = scalar_lea.hbm %s3182_s14, 128 }
 0x117   : > { %2350 = dma.hbm_to_vmem [thread:$0]  (!%p3705_p7), %s3279_s11, 64, %s616_s17, %s3144_s10  }
 0x118   : > { %p2724_p10 = scmp.ne.s32.totalorder %s3182_s14, %s2723_s25  ;;  %s2728_s16 = scalar_lea.hbm %s3617_s3, 256 }
 0x119   : > { %p2729_p3 = scmp.lt.u32.totalorder %s3182_s14, %s3617_s3  ;;  %p2730_p12 = scmp.lt.u32.totalorder %s2728_s16, %s2723_s25 }
 0x11a   : > { %p2726_p9 = pnand %p2724_p10, %p3703_p1  ;;  %p2732_p8 = scmp.lt.u32.totalorder %s2723_s25, %s3182_s14 }
 0x11b   : > { %p2731_p13 = por %p2730_p12, %p2729_p3 }
 0x11c   : > { %p2727_p5 = pneg %p2726_p9 }
 0x11d   : > { %p2733_p6 = por %p2732_p8, %p2731_p13 }
 0x11f   : > { %p2734_p2 = pnand %p2733_p6, %p2727_p5 }
 0x121   : > { %2737 = shalt.err (!%p2734_p2)
}
 0x122   : > { %s2738_s10 = scalar_lea.vmem %s3186_s29, 128  ;;  %s2872_s11 = smov [#allocation14]  }
 0x123   : > { %p2739_p11 = scmp.ne.s32.totalorder %s3186_s29, %s2738_s10  ;;  %s2743_s17 = sshll.u32 %s2872_s11, 4  ;;  %s2744_s17 = int_to_ptr.vmem [resolvable:$false] %s2743_s17 }
 0x124   : > { %s2745_s19 = scalar_lea.vmem %s2744_s17, 256  ;;  %p2746_p10 = scmp.lt.s32.totalorder %s3186_s29, %s2744_s17 }
 0x125   : > { %p2741_p4 = pnand %p2739_p11, %p3703_p1  ;;  %p2747_p9 = scmp.lt.s32.totalorder %s2745_s19, %s2738_s10 }
 0x127   : > { %p2742_p0 = pneg %p2741_p4  ;;  %p2748_p3 = por %p2747_p9, %p2746_p10 }
 0x129   : > { %p2749_p12 = pnand %p2748_p3, %p2742_p0 }
 0x12b   : > { %2752 = shalt.err (!%p2749_p12)
}
 0x12c   : > { %2353 = dma.hbm_to_vmem [thread:$0]  (!%p3705_p7), %s3182_s14, 128, %s3186_s29, %s3303_s8, %s3702_s13, %s3702_s13, %s2866_s15  }
 0x12d   : > { %s3707_s20 = sld [smem:[#allocation39_spill]] }
 0x133   : > { %p3708_p1 = scmp.ne.s32.totalorder %s3707_s20, 0 }
 0x134   : > { %s3709_s28 = sld [smem:[#allocation35_spill]] (!%p3708_p1) }
 0x135   : > { %645 = sbr.rel (%p3708_p1) target bundleno = 2729 (0xaa9), region = 80  ;;  %s3710_s4 = sld [smem:[#allocation41_spill]] (!%p3708_p1) }
 0x13a   : > { %s3333_s27 = sand.u32 (!%p3708_p1), 1, %s3709_s28  }
 0x13b   : > { %s2106_s24 = sshll.u32 (!%p3708_p1), %s3333_s27, 2  ;;  %s648_s5 = scalar_lea.sflag (!%p3708_p1), [#allocation9], %s3333_s27 }
 0x13c   : > { %s651_s30 = scalar_lea.vmem [#allocation8], %s2106_s24  ;;  %p3711_p5 = scmp.ne.s32.totalorder %s3710_s4, 0 }
 0x13e   : > { %2806 = dma.done.wait (%p3711_p5), %s648_s5, 64  }
 0x13f   : > { %2808 = vsyncadd (%p3711_p5), %s648_s5, 4294967232  ;;  %s3712_s26 = sld [smem:[#allocation38_spill]]  ;;  %s3343_s15 = sshll.u32 %s3333_s27, 3 }
 0x140   : > { %s660_s13 = scalar_lea.vmem [#allocation11], %s3343_s15 }
 0x145   : > { %s656_s29 = sand.u32 1, %s3712_s26  }
 0x146   : > { %s657_s14 = scalar_lea.sflag [#allocation12], %s656_s29 }
 0x147   : > { %2810 = dma.done.wait (%p3711_p5), %s657_s14, 192  }
 0x148   : > { %2812 = vsyncadd (%p3711_p5), %s657_s14, 4294967104  ;;  %s669_s8 = scalar_lea.vmem [#allocation13], %s2106_s24  ;;  %s675_s25 = scalar_lea.sflag [#allocation15], %s656_s29 }
 0x149   : > { %s678_s1 = scalar_lea.vmem [#allocation14], %s3343_s15 }
 0x14a   : > { %2814 = dma.done.wait (%p3711_p5), %s675_s25, 128  }
 0x14b   : > { %2816 = vsyncadd (%p3711_p5), %s675_s25, 4294967168  ;;  %p3713_p7 = scmp.eq.s32.totalorder %s3712_s26, 0 }
 0x14d   : > { %2818 = dma.done.wait (%p3713_p7), [#allocation15], 16   ;;  %p3714_p13 = pmov %p3713_p7 }
 0x14e   : > { %p3715_p8 = pmov %p3713_p7 }
 0x14f   : > { %2820 = vsyncadd (%p3714_p13), [#allocation15], 4294967280 }
 0x150   : > { %2822 = dma.done.wait (%p3715_p8), [#allocation18], 32   ;;  %p3716_p6 = pmov %p3713_p7 }
 0x152   : > { %2824 = vsyncadd (%p3716_p6), [#allocation18], 4294967264  ;;  %p3717_p2 = pmov %p3716_p6 }
 0x154   : > { %2826 = dma.done.wait (%p3717_p2), [#allocation21], 32   ;;  %p3718_p11 = pmov %p3717_p2 }
 0x155   : > { %p3719_p4 = pmov %p3717_p2 }
 0x156   : > { %2828 = vsyncadd (%p3718_p11), [#allocation21], 4294967264 }
 0x157   : > { %2830 = dma.done.wait (%p3719_p4), [#allocation24], 256   ;;  %p3720_p0 = pmov %p3717_p2 }
 0x158   : > { %vm804_vm0 = vcmask 261120   ;;  %v2152_v0 = vld [vmem:[%s660_s13] sm:$0xff]   ;;  %v2156_v1 = vld [vmem:[%s678_s1] sm:$0xff]   ;;  %v799_v7 = vld [vmem:[%s669_s8] sm:$0xf]  ;;  %s3721_s21 = sld [smem:[#allocation51_spill]] }
 0x159   : > { %2832 = vsyncadd (%p3720_p0), [#allocation24], 4294967040  ;;  %v797_v2 = vld [vmem:[%s651_s30] sm:$0xf]  ;;  %v3371_v3 = vunpack.c.l.bf16 %v2152_v0  ;;  %v2157_v4 = vunpack.c.l.bf16 %v2156_v1  ;;  %v3373_v5 = vunpack.c.h.bf16 %v2152_v0  ;;  %v2158_v6 = vunpack.c.h.bf16 %v2156_v1  ;;  %v2119_v57 = vld [vmem:[#allocation17] ss:$0 sm:$0xff] }
 0x15a   : > { %v798_v8 = vunpack.c.l.bf16 %v797_v2  ;;  %v800_v9 = vunpack.c.l.bf16 %v799_v7  ;;  %v2873_v23 = vmov 0.0   ;;  %vm2874_vm1 = vmmov 0   ;;  %v2437_v31 = vld [vmem:[#allocation23] sm:$0xff]   ;;  %v2438_v32 = vld [vmem:[#allocation23 + $0x8] sm:$0xff]   ;;  %v2120_v63 = vld [vmem:[#allocation19] ss:$0 sm:$0xff] }
 0x15b   : > { %v3376_v10 = vadd.f32 %v2157_v4, %v3371_v3  ;;  %v3379_v11 = vadd.f32 %v2158_v6, %v3373_v5  ;;  %2192 = vmatprep.subr.bf16.mxu0 %v2873_v23  ;;  %838 = vst.msk [vmem:[#allocation7] sm:$0xff] %vm804_vm0, %v2873_v23  ;;  %2200 = vmatprep.subr.bf16.mxu1 %v2873_v23  ;;  %v910_v25 = vsel %vm804_vm0, %v3373_v5, 0.0  ;;  %v907_v26 = vsel %vm804_vm0, %v3371_v3, 0.0  ;;  %s3723_s20 = sld [smem:[#allocation46_spill]]  ;;  %s3724_s24 = sld [smem:[#allocation50_spill]] }
 0x15c   : > { %v3387_v15 = vadd.f32 %v800_v9, %v798_v8  ;;  %2196 = vmatprep.mubr.msk.bf16.mxu0 %vm2874_vm1, %v2873_v23  ;;  %2204 = vmatprep.mubr.msk.bf16.mxu1 %vm2874_vm1, %v2873_v23  ;;  %v916_v27 = vmul.f32 %v3373_v5, %v3373_v5  ;;  %v915_v28 = vmul.f32 %v3371_v3, %v3371_v3  ;;  %v2118_v8 = vld [vmem:[#allocation16] ss:$0 sm:$0xff]  ;;  %vm836_vm2 = vcmask 257024   ;;  %s2875_s26 = smov 120   ;;  %s2876_s29 = smov 112  }
 0x15d   : > { %v856_v12 = vsel %vm804_vm0, %v3376_v10, 0.0  ;;  %v865_v13 = vmul.f32 %v3376_v10, %v3376_v10  ;;  %v866_v14 = vmul.f32 %v3379_v11, %v3379_v11  ;;  %v859_v17 = vsel %vm804_vm0, %v3379_v11, 0.0  ;;  %2201 = vmatpush3.bf16.msra.mxu1 %v2437_v31  ;;  %s3725_s8 = sld [smem:[#allocation52_spill]]  ;;  %s2877_s25 = smov 104  }
 0x15e   : > { %857 = vadd.xlane.f32.xlu0 %v856_v12  ;;  %v810_v19 = vmul.f32 %v3387_v15, %v3387_v15  ;;  %v805_v20 = vsel %vm804_vm0, %v3387_v15, 0.0  ;;  %s3722_s6 = smov %s3721_s21  ;;  %v2433_v22 = vld [vmem:[%s3721_s21] sm:$0xff]   ;;  %v920_v29 = vsel %vm804_vm0, %v916_v27, 0.0  ;;  %v917_v30 = vsel %vm804_vm0, %v915_v28, 0.0  ;;  %2202 = vmatprep.subr.bf16.mxu1 %v2873_v23  ;;  %s3726_s17 = sld [smem:[#allocation37_spill]] }
 0x15f   : > { %v867_v16 = vsel %vm804_vm0, %v865_v13, 0.0  ;;  %v870_v18 = vsel %vm804_vm0, %v866_v14, 0.0  ;;  %2193 = vmatpush3.bf16.msra.mxu0 %v2433_v22  ;;  %v2434_v24 = vld [vmem:[%s3722_s6 + $0x8] sm:$0xff]   ;;  %vm1157_vm3 = vcmask 64512   ;;  %vm1204_vm4 = vcmask 130048   ;;  %s3727_s19 = sld [smem:[#allocation42_spill]] }
 0x160   : > { %868 = vadd.xlane.f32.xlu1 %v867_v16  ;;  %v811_v21 = vsel %vm804_vm0, %v810_v19, 0.0  ;;  %2194 = vmatprep.subr.bf16.mxu0 %v2873_v23  ;;  %vm1266_vm5 = vcmask 1043456   ;;  %s3728_s4 = sld [smem:[#allocation53_spill]]  ;;  %s776_s30 = scalar_lea.vmem [#allocation25], %s3343_s15 }
 0x161   : > { %2203 = vmatpush3.bf16.msra.mxu1 %v2438_v32  ;;  %v2117_v2 = vld [vmem:[%s3723_s20] ss:$0 sm:$0xff]  ;;  %s3729_s13 = sld [smem:[#allocation54_spill]]  ;;  %s1806_s1 = scalar_lea.sflag [#allocation10], %s3333_s27 }
 0x162   : > { %860 = vadd.xlane.f32.xlu0 %v859_v17  ;;  %2216 = vmatprep.subr.bf16.mxu1 %v2873_v23  ;;  %v2435_v13 = vld [vmem:[%s3724_s24] sm:$0xff]   ;;  %s2878_s15 = smov [#allocation25]  }
 0x163   : > { %2195 = vmatpush3.bf16.msra.mxu0 %v2434_v24  ;;  %s2757_s16 = sshll.u32 %s2878_s15, 4  ;;  %s2758_s16 = int_to_ptr.vmem [resolvable:$false] %s2757_s16 }
 0x164   : > { %871 = vadd.xlane.f32.xlu1 %v870_v18  ;;  %2208 = vmatprep.subr.bf16.mxu0 %v2873_v23  ;;  %s2146_s5 = sshll.u32 %s3726_s17, 7  ;;  %s2759_s21 = scalar_lea.vmem %s2758_s16, 256 }
 0x165   : > { %p3730_p9 = scmp.ne.s32.totalorder %s3727_s19, 0 }
 0x166   : > { %806 = vadd.xlane.f32.xlu0 %v805_v20 }
 0x168   : > { %812 = vadd.xlane.f32.xlu1 %v811_v21 }
 0x16a   : > { %908 = vadd.xlane.f32.xlu0 %v907_v26 }
 0x16c   : > { %911 = vadd.xlane.f32.xlu1 %v910_v25 }
 0x16e   : > { %918 = vadd.xlane.f32.xlu0 %v917_v30 }
 0x170   : > { %921 = vadd.xlane.f32.xlu1 %v920_v29 }
 0x1eb   : > { %v858_v33 = vpop.xlane.xlu0 %857 }
 0x1ec   : > { %v863_v34 = vmul.f32 0.03125, %v858_v33 }
 0x1ed   : > { %v869_v35 = vpop.xlane.xlu1 %868 }
 0x1ee   : > { %v875_v36 = vmul.f32 %v863_v34, %v863_v34  ;;  %v873_v37 = vmul.f32 0.03125, %v869_v35  ;;  %v883_v54 = vsub.f32 %v3376_v10, %v863_v34  ;;  %v2121_v35 = vld [vmem:[#allocation20] ss:$0 sm:$0xff] }
 0x1ef   : > { %v861_v38 = vpop.xlane.xlu0 %860 }
 0x1f0   : > { %v877_v39 = vsub.f32 %v873_v37, %v875_v36  ;;  %v864_v40 = vmul.f32 0.03125, %v861_v38  ;;  %v2122_v38 = vld [vmem:[#allocation22] ss:$0 sm:$0xff] }
 0x1f1   : > { %v872_v41 = vpop.xlane.xlu1 %871 }
 0x1f2   : > { %v879_v42 = vadd.f32 1e-05, %v877_v39  ;;  %v876_v43 = vmul.f32 %v864_v40, %v864_v40  ;;  %v874_v44 = vmul.f32 0.03125, %v872_v41  ;;  %v884_v58 = vsub.f32 %v3379_v11, %v864_v40 }
 0x1f3   : > { %v807_v45 = vpop.xlane.xlu0 %806 }
 0x1f4   : > { %2439 = vrsqrt.f32 %v879_v42  ;;  %v878_v46 = vsub.f32 %v874_v44, %v876_v43  ;;  %v809_v47 = vmul.f32 0.03125, %v807_v45 }
 0x1f5   : > { %v813_v48 = vpop.xlane.xlu1 %812 }
 0x1f6   : > { %v880_v49 = vadd.f32 1e-05, %v878_v46  ;;  %v815_v50 = vmul.f32 %v809_v47, %v809_v47  ;;  %v814_v51 = vmul.f32 0.03125, %v813_v48  ;;  %v819_v62 = vsub.f32 %v3387_v15, %v809_v47  ;;  %v2436_v15 = vld [vmem:[%s3724_s24 + $0x8] sm:$0xff]  }
 0x1f7   : > { %v909_v18 = vpop.xlane.xlu0 %908 }
 0x1f8   : > { %2441 = vrsqrt.f32 %v880_v49  ;;  %v816_v52 = vsub.f32 %v814_v51, %v815_v50  ;;  %v913_v20 = vmul.f32 0.03125, %v909_v18 }
 0x1f9   : > { %v912_v17 = vpop.xlane.xlu1 %911 }
 0x1fa   : > { %v817_v53 = vadd.f32 1e-05, %v816_v52  ;;  %v914_v19 = vmul.f32 0.03125, %v912_v17  ;;  %v925_v22 = vmul.f32 %v913_v20, %v913_v20  ;;  %v933_v33 = vsub.f32 %v3371_v3, %v913_v20 }
 0x1fb   : > { %v919_v25 = vpop.xlane.xlu0 %918 }
 0x1fc   : > { %2443 = vrsqrt.f32 %v817_v53  ;;  %v926_v21 = vmul.f32 %v914_v19, %v914_v19  ;;  %v923_v27 = vmul.f32 0.03125, %v919_v25  ;;  %v934_v32 = vsub.f32 %v3373_v5, %v914_v19 }
 0x1fd   : > { %v922_v24 = vpop.xlane.xlu1 %921 }
 0x1fe   : > { %v2440_v55 = vpop.eup %2439  ;;  %v924_v26 = vmul.f32 0.03125, %v922_v24  ;;  %v927_v29 = vsub.f32 %v923_v27, %v925_v22 }
 0x1ff   : > { %v885_v56 = vmul.f32 %v2440_v55, %v883_v54 }
 0x200   : > { %v928_v28 = vsub.f32 %v924_v26, %v926_v21  ;;  %v929_v31 = vadd.f32 1e-05, %v927_v29 }
 0x201   : > { %v893_v60 = vmul.f32 %v2119_v57, %v885_v56 }
 0x202   : > { %v2442_v59 = vpop.eup %2441  ;;  %v930_v30 = vadd.f32 1e-05, %v928_v28 }
 0x203   : > { %v886_v61 = vmul.f32 %v2442_v59, %v884_v58  ;;  %v901_v4 = vadd.f32 %v2120_v63, %v893_v60 }
 0x204   : > { %2445 = vrsqrt.f32 %v930_v30 }
 0x205   : > { %v894_v0 = vmul.f32 %v2119_v57, %v886_v61  ;;  %2447 = vrsqrt.f32 %v929_v31 }
 0x206   : > { %v2444_v1 = vpop.eup %2443 }
 0x207   : > { %v902_v6 = vadd.f32 %v2120_v63, %v894_v0  ;;  %v820_v7 = vmul.f32 %v2444_v1, %v819_v62 }
 0x209   : > { %v903_v9 = vpack.c.bf16 %v902_v6, %v901_v4  ;;  %v827_v10 = vmul.f32 %v2117_v2, %v820_v7 }
 0x20b   : > { %904 = vst.msk [vmem:[#allocation3] sm:$0xff] %vm804_vm0, %v903_v9  ;;  %v834_v11 = vadd.f32 %v2118_v8, %v827_v10 }
 0x20d   : > { %v835_v12 = vpack.c.bf16 %v834_v11, %v834_v11 }
 0x20e   : > { %v2446_v34 = vpop.eup %2445 }
 0x20f   : > { %837 = vst.msk [vmem:[#allocation2] sm:$0xf] %vm836_vm2, %v835_v12  ;;  %v2448_v36 = vpop.eup %2447  ;;  %v936_v37 = vmul.f32 %v2446_v34, %v934_v32 }
 0x210   : > { %v935_v39 = vmul.f32 %v2448_v36, %v933_v33 }
 0x211   : > { %v944_v40 = vmul.f32 %v2121_v35, %v936_v37 }
 0x212   : > { %v958_v14 = vld [vmem:[#allocation3] sm:$0xff]  ;;  %v943_v41 = vmul.f32 %v2121_v35, %v935_v39 }
 0x213   : > { %2197 = vmatmul.mubr.msk.bf16.vlgmr.msra.gmra.mrb[0].mxu0 %vm804_vm0, %v958_v14  ;;  %v952_v42 = vadd.f32 %v2122_v38, %v944_v40  ;;  %v1262_v14 = vld [vmem:[%s3725_s8] sm:$0xf]  ;;  %v1261_v40 = vld [vmem:[#allocation7] sm:$0xff] }
 0x214   : > { %2209 = vmatpush3.bf16.msra.mxu0 %v2435_v13  ;;  %2212 = vmatprep.mubr.msk.bf16.mxu0 %vm2874_vm1, %v2873_v23  ;;  %v951_v43 = vadd.f32 %v2122_v38, %v943_v41 }
 0x215   : > { %2210 = vmatprep.subr.bf16.mxu0 %v2873_v23 }
 0x216   : > { %v1089_v16 = vld [vmem:[#allocation2] sm:$0xf]  ;;  %v953_v44 = vpack.c.bf16 %v952_v42, %v951_v43 }
 0x218   : > { %2211 = vmatpush3.bf16.msra.mxu0 %v2436_v15  ;;  %954 = vst.msk [vmem:[#allocation4] sm:$0xff] %vm804_vm0, %v953_v44  ;;  %v1268_v15 = vsel %vm1266_vm5, %v1262_v14, 0  ;;  %v1584_v14 = vld [vmem:[%s3725_s8 + $0x8] sm:$0xf] }
 0x219   : > { %2222 = vmatprep.subr.bf16.mxu0 %v2873_v23 }
 0x21b   : > { %2213 = vmatmul.mubr.msk.bf16.vlgmr.msra.gmra.mrb[4].mxu0 %vm804_vm0, %v1089_v16 }
 0x21c   : > { %2224 = vmatprep.mubr.msk.bf16.mxu0 %vm2874_vm1, %v2873_v23 }
 0x21f   : > { %v1024_v45 = vld [vmem:[#allocation4] sm:$0xff] }
 0x220   : > { %2205 = vmatmul.mubr.msk.bf16.vlgmr.msra.gmra.mrb[0].mxu1 %vm804_vm0, %v1024_v45 }
 0x221   : > { %2218 = vmatprep.mubr.msk.bf16.mxu1 %vm2874_vm1, %v2873_v23 }
 0x2e6   : > { %v1013_v3 = vpop.f32.mrb[0].mxu0 }
 0x2e7   : > { %v2198_v5 = vpop.f32.mrb[1].mxu0 }
 0x2e8   : > { %v1016_v46 = vpop.f32.mrb[2].mxu0 }
 0x2e9   : > { %v1020_v47 = vpack.c.bf16 %v1016_v46, %v1013_v3  ;;  %v2199_v48 = vpop.f32.mrb[3].mxu0  ;;  %v1425_v3 = vld [vmem:[%s3725_s8 + $0x4] sm:$0xf] }
 0x2ea   : > { %v1430_v5 = vsel %vm1266_vm5, %v1425_v3, 0 }
 0x2eb   : > { %1023 = vst.msk [vmem:[#allocation5] sm:$0xff] %vm804_vm0, %v1020_v47 }
 0x2ee   : > { %v1144_v49 = vpop.f32.mrb[4].mxu0 }
 0x2ef   : > { %v2214_v50 = vpop.f32.mrb[5].mxu0  ;;  %v3461_v55 = vpack.c.bf16 %v1144_v49, %v1144_v49 }
 0x2f0   : > { %v1147_v51 = vpop.f32.mrb[6].mxu0 }
 0x2f1   : > { %v2215_v52 = vpop.f32.mrb[7].mxu0 }
 0x2f2   : > { %v3454_v53 = vld [vmem:[#allocation5] sm:$0xff] }
 0x2f3   : > { %1316 = vrot.lane.b32.xlu1 %v3454_v53, %s2875_s26  ;;  %v1162_v54 = vsel %vm1157_vm3, %v3454_v53, 0  ;;  %v1078_v56 = vpop.f32.mrb[0].mxu1 }
 0x2f4   : > { %2217 = vmatpush3.bf16.xpose.msra.mxu1 %v1162_v54  ;;  %v2206_v57 = vpop.f32.mrb[1].mxu1 }
 0x2f5   : > { %2228 = vmatprep.subr.bf16.mxu1 %v2873_v23  ;;  %v1081_v58 = vpop.f32.mrb[2].mxu1 }
 0x2f6   : > { %v1085_v59 = vpack.c.bf16 %v1081_v58, %v1078_v56  ;;  %v2207_v60 = vpop.f32.mrb[3].mxu1 }
 0x2f8   : > { %1088 = vst.msk [vmem:[#allocation6] sm:$0xff] %vm804_vm0, %v1085_v59 }
 0x2fb   : > { %2219 = vmatmul.mubr.msk.bf16.vlgmr.msra.gmra.mrb[4].mxu1 %vm1157_vm3, %v3461_v55 }
 0x2fc   : > { %2230 = vmatprep.mubr.msk.bf16.mxu1 %vm2874_vm1, %v2873_v23  ;;  %2229 = vmatpush3.bf16.msra.mxu1 %v1268_v15  ;;  %v1589_v15 = vsel %vm1266_vm5, %v1584_v14, 0 }
 0x2fd   : > { %2240 = vmatprep.subr.bf16.mxu1 %v2873_v23 }
 0x2ff   : > { %v3468_v61 = vld [vmem:[#allocation6] sm:$0xff] }
 0x300   : > { %2223 = vmatpush3.bf16.msra.mxu0 %v3468_v61 }
 0x301   : > { %2234 = vmatprep.subr.bf16.mxu0 %v2873_v23 }
 0x365   : > { %v1317_v9 = vpop.permute.xlu1 %1316 }
 0x366   : > { %v1322_v12 = vsel %vm1157_vm3, %v1317_v9, 0 }
 0x3ce   : > { %v1198_v62 = vpop.f32.mrb[4].mxu1 }
 0x3cf   : > { %v2220_v63 = vpop.f32.mrb[5].mxu1  ;;  %v1205_v0 = vsel %vm1204_vm4, %v1198_v62, -inf }
 0x3d0   : > { %1206 = vmax.xlane.f32.xlu0 %v1205_v0  ;;  %v1201_v1 = vpop.f32.mrb[6].mxu1 }
 0x3d1   : > { %v2221_v2 = vpop.f32.mrb[7].mxu1 }
 0x3e6   : > { %1313 = vrot.lane.b32.xlu0 %v3461_v55, %s2875_s26 }
 0x45d   : > { %v1207_v4 = vpop.xlane.xlu0 %1206 }
 0x45e   : > { %v1208_v6 = vsub.f32 %v1198_v62, %v1207_v4 }
 0x460   : > { %v1209_v7 = vmul.f32 1.442695, %v1208_v6 }
 0x461   : > { %v1314_v13 = vpop.permute.xlu0 %1313 }
 0x462   : > { %2449 = vpow2.f32 %v1209_v7 }
 0x46c   : > { %v2450_v8 = vpop.eup %2449 }
 0x46d   : > { %v1211_v10 = vsel %vm1204_vm4, %v2450_v8, 0.0  ;;  %v1214_v11 = vpack.c.bf16 %v2450_v8, %v2450_v8 }
 0x46e   : > { %1212 = vadd.xlane.f32.xlu1 %v1211_v10 }
 0x46f   : > { %2225 = vmatmul.mubr.msk.bf16.vlgmr.msra.gmra.mrb[8].mxu0 %vm1204_vm4, %v1214_v11 }
 0x470   : > { %2235 = vmatpush3.bf16.xpose.msra.mxu0 %v1322_v12  ;;  %2236 = vmatprep.mubr.msk.bf16.mxu0 %vm2874_vm1, %v2873_v23 }
 0x471   : > { %2246 = vmatprep.subr.bf16.mxu0 %v2873_v23 }
 0x477   : > { %2237 = vmatmul.mubr.msk.bf16.vlgmr.msra.gmra.mrb[12].mxu0 %vm1157_vm3, %v1314_v13 }
 0x478   : > { %2248 = vmatprep.mubr.msk.bf16.mxu0 %vm2874_vm1, %v2873_v23  ;;  %2247 = vmatpush3.bf16.msra.mxu0 %v1430_v5 }
 0x479   : > { %2258 = vmatprep.subr.bf16.mxu0 %v2873_v23 }
 0x47f   : > { %1375 = vrot.lane.b32.xlu1 %v3468_v61, %s2875_s26  ;;  %s1820_s26 = sshll.u32 %s776_s30, 4  ;;  %s3566_s26 = int_to_ptr.vmem [resolvable:$true] %s1820_s26 }
 0x480   : > { %s2753_s18 = scalar_lea.vmem %s3566_s26, 128  ;;  %p2760_p1 = scmp.lt.s32.totalorder %s3566_s26, %s2758_s16 }
 0x481   : > { %p2754_p10 = scmp.ne.s32.totalorder %s3566_s26, %s2753_s18  ;;  %p2761_p5 = scmp.lt.s32.totalorder %s2759_s21, %s2753_s18 }
 0x483   : > { %1474 = vrot.lane.b32.xlu1 %v3461_v55, %s2876_s29  ;;  %p2755_p3 = pnand %p2754_p10, %p3730_p9  ;;  %p2762_p7 = por %p2761_p5, %p2760_p1 }
 0x485   : > { %p2756_p12 = pneg %p2755_p3 }
 0x487   : > { %p2763_p13 = pnand %p2762_p7, %p2756_p12 }
 0x4fb   : > { %v1213_v16 = vpop.xlane.xlu1 %1212 }
 0x4fc   : > { %2451 = vrcp.f32 %v1213_v16 }
 0x4ff   : > { %v1376_v25 = vpop.permute.xlu1 %1375 }
 0x503   : > { %v1475_v39 = vpop.permute.xlu1 %1474 }
 0x506   : > { %v2452_v17 = vpop.eup %2451 }
 0x542   : > { %v1252_v18 = vpop.f32.mrb[8].mxu0 }
 0x543   : > { %v1259_v19 = vmul.f32 %v2452_v17, %v1252_v18  ;;  %v2226_v20 = vpop.f32.mrb[9].mxu0 }
 0x544   : > { %v1255_v21 = vpop.f32.mrb[10].mxu0 }
 0x545   : > { %v1260_v22 = vpack.c.bf16 %v1259_v19, %v1259_v19  ;;  %v2227_v24 = vpop.f32.mrb[11].mxu0 }
 0x547   : > { %2231 = vmatmul.mubr.msk.bf16.vlgmr.msra.gmra.mrb[8].mxu1 %vm1157_vm3, %v1260_v22 }
 0x548   : > { %2241 = vmatpush3.bf16.msra.mxu1 %v1376_v25  ;;  %2242 = vmatprep.mubr.msk.bf16.mxu1 %vm2874_vm1, %v2873_v23 }
 0x549   : > { %2252 = vmatprep.subr.bf16.mxu1 %v2873_v23 }
 0x54a   : > { %v1358_v26 = vpop.f32.mrb[12].mxu0 }
 0x54b   : > { %v2238_v27 = vpop.f32.mrb[13].mxu0  ;;  %v1364_v28 = vsel %vm1204_vm4, %v1358_v26, -inf }
 0x54c   : > { %1365 = vmax.xlane.f32.xlu0 %v1364_v28  ;;  %v1361_v29 = vpop.f32.mrb[14].mxu0 }
 0x54d   : > { %v2239_v30 = vpop.f32.mrb[15].mxu0 }
 0x562   : > { %1476 = vrot.lane.b32.xlu0 %v3454_v53, %s2876_s29 }
 0x5d9   : > { %v1366_v31 = vpop.xlane.xlu0 %1365 }
 0x5da   : > { %v1367_v32 = vsub.f32 %v1358_v26, %v1366_v31 }
 0x5dc   : > { %v1368_v33 = vmul.f32 1.442695, %v1367_v32 }
 0x5dd   : > { %v1477_v35 = vpop.permute.xlu0 %1476 }
 0x5de   : > { %2453 = vpow2.f32 %v1368_v33  ;;  %v1482_v38 = vsel %vm1157_vm3, %v1477_v35, 0 }
 0x5e8   : > { %v2454_v34 = vpop.eup %2453 }
 0x5e9   : > { %v1370_v36 = vsel %vm1204_vm4, %v2454_v34, 0.0  ;;  %v1373_v37 = vpack.c.bf16 %v2454_v34, %v2454_v34 }
 0x5ea   : > { %1371 = vadd.xlane.f32.xlu1 %v1370_v36  ;;  %v1743_v36 = vld [vmem:[%s3725_s8 + $0xc] sm:$0xf] }
 0x5eb   : > { %2243 = vmatmul.mubr.msk.bf16.vlgmr.msra.gmra.mrb[12].mxu1 %vm1204_vm4, %v1373_v37  ;;  %v1748_v37 = vsel %vm1266_vm5, %v1743_v36, 0 }
 0x5ec   : > { %2253 = vmatpush3.bf16.xpose.msra.mxu1 %v1482_v38  ;;  %2254 = vmatprep.mubr.msk.bf16.mxu1 %vm2874_vm1, %v2873_v23 }
 0x5ed   : > { %2264 = vmatprep.subr.bf16.mxu1 %v2873_v23 }
 0x5f3   : > { %2255 = vmatmul.mubr.msk.bf16.vlgmr.msra.gmra.mrb[16].mxu1 %vm1157_vm3, %v1475_v39 }
 0x5f4   : > { %2266 = vmatprep.mubr.msk.bf16.mxu1 %vm2874_vm1, %v2873_v23  ;;  %2265 = vmatpush3.bf16.msra.mxu1 %v1589_v15 }
 0x5f5   : > { %2276 = vmatprep.subr.bf16.mxu1 %v2873_v23 }
 0x5fb   : > { %1635 = vrot.lane.b32.xlu1 %v3454_v53, %s2877_s25 }
 0x5ff   : > { %1633 = vrot.lane.b32.xlu1 %v3461_v55, %s2877_s25 }
 0x61a   : > { %v1304_v41 = vpop.f32.mrb[8].mxu1 }
 0x61b   : > { %v1310_v42 = vadd.f32 %v1304_v41, %v1261_v40  ;;  %v2232_v43 = vpop.f32.mrb[9].mxu1 }
 0x61c   : > { %v1307_v44 = vpop.f32.mrb[10].mxu1 }
 0x61d   : > { %1311 = vst.msk [vmem:[#allocation7] sm:$0xff] %vm804_vm0, %v1310_v42  ;;  %v2233_v45 = vpop.f32.mrb[11].mxu1 }
 0x624   : > { %v1424_v8 = vld [vmem:[#allocation7] sm:$0xff] }
 0x677   : > { %v1372_v46 = vpop.xlane.xlu1 %1371 }
 0x678   : > { %2455 = vrcp.f32 %v1372_v46 }
 0x67b   : > { %v1636_v1 = vpop.permute.xlu1 %1635 }
 0x67c   : > { %v1641_v6 = vsel %vm1157_vm3, %v1636_v1, 0 }
 0x67f   : > { %v1634_v7 = vpop.permute.xlu1 %1633 }
 0x682   : > { %v2456_v47 = vpop.eup %2455 }
 0x6be   : > { %v1415_v48 = vpop.f32.mrb[12].mxu1 }
 0x6bf   : > { %v1422_v49 = vmul.f32 %v2456_v47, %v1415_v48  ;;  %v2244_v50 = vpop.f32.mrb[13].mxu1 }
 0x6c0   : > { %v1418_v51 = vpop.f32.mrb[14].mxu1 }
 0x6c1   : > { %v1423_v52 = vpack.c.bf16 %v1422_v49, %v1422_v49  ;;  %v2245_v53 = vpop.f32.mrb[15].mxu1 }
 0x6c3   : > { %2249 = vmatmul.mubr.msk.bf16.vlgmr.msra.gmra.mrb[16].mxu0 %vm1157_vm3, %v1423_v52 }
 0x6c4   : > { %2260 = vmatprep.mubr.msk.bf16.mxu0 %vm2874_vm1, %v2873_v23 }
 0x6c6   : > { %v1518_v54 = vpop.f32.mrb[16].mxu1 }
 0x6c7   : > { %v2256_v55 = vpop.f32.mrb[17].mxu1  ;;  %v1524_v56 = vsel %vm1204_vm4, %v1518_v54, -inf }
 0x6c8   : > { %1525 = vmax.xlane.f32.xlu0 %v1524_v56  ;;  %v1521_v57 = vpop.f32.mrb[18].mxu1  ;;  %v2144_v55 = vld [vmem:[%s3728_s4] ss:$0 sm:$0xff] }
 0x6c9   : > { %v2257_v58 = vpop.f32.mrb[19].mxu1 }
 0x6de   : > { %1534 = vrot.lane.b32.xlu0 %v3468_v61, %s2876_s29 }
 0x755   : > { %v1526_v59 = vpop.xlane.xlu0 %1525 }
 0x756   : > { %v1527_v60 = vsub.f32 %v1518_v54, %v1526_v59 }
 0x758   : > { %v1528_v62 = vmul.f32 1.442695, %v1527_v60 }
 0x759   : > { %v1535_v63 = vpop.permute.xlu0 %1534 }
 0x75a   : > { %2457 = vpow2.f32 %v1528_v62  ;;  %2259 = vmatpush3.bf16.msra.mxu0 %v1535_v63 }
 0x75b   : > { %2270 = vmatprep.subr.bf16.mxu0 %v2873_v23 }
 0x764   : > { %v2458_v0 = vpop.eup %2457 }
 0x765   : > { %v1530_v2 = vsel %vm1204_vm4, %v2458_v0, 0.0  ;;  %v1533_v4 = vpack.c.bf16 %v2458_v0, %v2458_v0 }
 0x766   : > { %1531 = vadd.xlane.f32.xlu1 %v1530_v2 }
 0x767   : > { %2261 = vmatmul.mubr.msk.bf16.vlgmr.msra.gmra.mrb[20].mxu0 %vm1204_vm4, %v1533_v4 }
 0x768   : > { %2271 = vmatpush3.bf16.xpose.msra.mxu0 %v1641_v6  ;;  %2272 = vmatprep.mubr.msk.bf16.mxu0 %vm2874_vm1, %v2873_v23 }
 0x769   : > { %2282 = vmatprep.subr.bf16.mxu0 %v2873_v23 }
 0x76f   : > { %2273 = vmatmul.mubr.msk.bf16.vlgmr.msra.gmra.mrb[24].mxu0 %vm1157_vm3, %v1634_v7 }
 0x770   : > { %2284 = vmatprep.mubr.msk.bf16.mxu0 %vm2874_vm1, %v2873_v23  ;;  %2283 = vmatpush3.bf16.msra.mxu0 %v1748_v37 }
 0x796   : > { %v1466_v9 = vpop.f32.mrb[16].mxu0 }
 0x797   : > { %v1472_v10 = vadd.f32 %v1466_v9, %v1424_v8  ;;  %v2250_v11 = vpop.f32.mrb[17].mxu0 }
 0x798   : > { %v1469_v12 = vpop.f32.mrb[18].mxu0 }
 0x799   : > { %1473 = vst.msk [vmem:[#allocation7] sm:$0xff] %vm804_vm0, %v1472_v10  ;;  %v2251_v13 = vpop.f32.mrb[19].mxu0 }
 0x7f3   : > { %v1532_v16 = vpop.xlane.xlu1 %1531 }
 0x7f4   : > { %2459 = vrcp.f32 %v1532_v16 }
 0x7fe   : > { %v2460_v17 = vpop.eup %2459 }
 0x83a   : > { %v1574_v18 = vpop.f32.mrb[20].mxu0 }
 0x83b   : > { %v1581_v19 = vmul.f32 %v2460_v17, %v1574_v18  ;;  %v2262_v20 = vpop.f32.mrb[21].mxu0 }
 0x83c   : > { %v1577_v21 = vpop.f32.mrb[22].mxu0 }
 0x83d   : > { %v1582_v22 = vpack.c.bf16 %v1581_v19, %v1581_v19  ;;  %v2263_v24 = vpop.f32.mrb[23].mxu0 }
 0x83f   : > { %2267 = vmatmul.mubr.msk.bf16.vlgmr.msra.gmra.mrb[20].mxu1 %vm1157_vm3, %v1582_v22 }
 0x840   : > { %2278 = vmatprep.mubr.msk.bf16.mxu1 %vm2874_vm1, %v2873_v23 }
 0x842   : > { %v1677_v25 = vpop.f32.mrb[24].mxu0 }
 0x843   : > { %v2274_v26 = vpop.f32.mrb[25].mxu0  ;;  %v1683_v27 = vsel %vm1204_vm4, %v1677_v25, -inf }
 0x844   : > { %1684 = vmax.xlane.f32.xlu0 %v1683_v27  ;;  %v1680_v28 = vpop.f32.mrb[26].mxu0 }
 0x845   : > { %v2275_v29 = vpop.f32.mrb[27].mxu0 }
 0x85a   : > { %1693 = vrot.lane.b32.xlu0 %v3468_v61, %s2877_s25  ;;  %v1583_v61 = vld [vmem:[#allocation7] sm:$0xff]  ;;  %s3564_s25 = scalar_lea.hbm %s3729_s13, %s2146_s5 }
 0x8d1   : > { %v1685_v30 = vpop.xlane.xlu0 %1684 }
 0x8d2   : > { %v1686_v31 = vsub.f32 %v1677_v25, %v1685_v30 }
 0x8d4   : > { %v1687_v32 = vmul.f32 1.442695, %v1686_v31 }
 0x8d5   : > { %v1694_v33 = vpop.permute.xlu0 %1693 }
 0x8d6   : > { %2461 = vpow2.f32 %v1687_v32  ;;  %2277 = vmatpush3.bf16.msra.mxu1 %v1694_v33 }
 0x8e0   : > { %v2462_v34 = vpop.eup %2461 }
 0x8e1   : > { %v1689_v35 = vsel %vm1204_vm4, %v2462_v34, 0.0  ;;  %v1692_v23 = vpack.c.bf16 %v2462_v34, %v2462_v34 }
 0x8e2   : > { %1690 = vadd.xlane.f32.xlu1 %v1689_v35 }
 0x8e3   : > { %2279 = vmatmul.mubr.msk.bf16.vlgmr.msra.gmra.mrb[24].mxu1 %vm1204_vm4, %v1692_v23 }
 0x912   : > { %v1625_v38 = vpop.f32.mrb[20].mxu1 }
 0x913   : > { %v1631_v39 = vadd.f32 %v1625_v38, %v1583_v61  ;;  %v2268_v40 = vpop.f32.mrb[21].mxu1 }
 0x914   : > { %v1628_v41 = vpop.f32.mrb[22].mxu1 }
 0x915   : > { %1632 = vst.msk [vmem:[#allocation7] sm:$0xff] %vm804_vm0, %v1631_v39  ;;  %v2269_v42 = vpop.f32.mrb[23].mxu1 }
 0x91c   : > { %v1742_v49 = vld [vmem:[#allocation7] sm:$0xff] }
 0x96f   : > { %v1691_v43 = vpop.xlane.xlu1 %1690 }
 0x970   : > { %2463 = vrcp.f32 %v1691_v43 }
 0x97a   : > { %v2464_v44 = vpop.eup %2463 }
 0x9b6   : > { %v1733_v45 = vpop.f32.mrb[24].mxu1 }
 0x9b7   : > { %v1740_v3 = vmul.f32 %v2464_v44, %v1733_v45  ;;  %v2280_v5 = vpop.f32.mrb[25].mxu1 }
 0x9b8   : > { %v1736_v46 = vpop.f32.mrb[26].mxu1 }
 0x9b9   : > { %v1741_v47 = vpack.c.bf16 %v1740_v3, %v1740_v3  ;;  %v2281_v48 = vpop.f32.mrb[27].mxu1 }
 0x9bb   : > { %2285 = vmatmul.mubr.msk.bf16.vlgmr.msra.gmra.mrb[28].mxu0 %vm1157_vm3, %v1741_v47 }
 0xa8e   : > { %v1784_v50 = vpop.f32.mrb[28].mxu0 }
 0xa8f   : > { %v1790_v51 = vadd.f32 %v1784_v50, %v1742_v49  ;;  %v2286_v52 = vpop.f32.mrb[29].mxu0 }
 0xa90   : > { %v1787_v53 = vpop.f32.mrb[30].mxu0 }
 0xa91   : > { %1791 = vst.msk [vmem:[#allocation7] sm:$0xff] %vm804_vm0, %v1790_v51  ;;  %v2287_v54 = vpop.f32.mrb[31].mxu0 }
 0xa98   : > { %v1795_v56 = vld [vmem:[#allocation7] sm:$0xff] }
 0xa99   : > { %v1803_v57 = vadd.f32 %v2144_v55, %v1795_v56 }
 0xa9b   : > { %1804 = vst.msk [vmem:[%s776_s30] sm:$0xff] %vm804_vm0, %v1803_v57 }
 0xa9c   : > { %2766 = shalt.err (!%p2763_p13)
}
 0xa9d   : > { %s2767_s27 = scalar_lea.hbm %s3564_s25, 128  ;;  %s2771_s17 = scalar_lea.hbm %s3729_s13, 256 }
 0xa9e   : > { %p2768_p8 = scmp.ne.s32.totalorder %s3564_s25, %s2767_s27  ;;  %p2772_p11 = scmp.lt.u32.totalorder %s3564_s25, %s3729_s13 }
 0xa9f   : > { %p2773_p4 = scmp.lt.u32.totalorder %s2771_s17, %s2767_s27  ;;  %p2775_p10 = scmp.lt.u32.totalorder %s2767_s27, %s3564_s25 }
 0xaa0   : > { %p2769_p6 = pnand %p2768_p8, %p3730_p9 }
 0xaa1   : > { %p2774_p0 = por %p2773_p4, %p2772_p11 }
 0xaa2   : > { %p2770_p2 = pneg %p2769_p6 }
 0xaa3   : > { %p2776_p3 = por %p2775_p10, %p2774_p0 }
 0xaa5   : > { %p2777_p12 = pnand %p2776_p3, %p2770_p2 }
 0xaa7   : > { %2780 = shalt.err (!%p2777_p12)
}
 0xaa8   : > { %2320 = dma.vmem_to_hbm [thread:$0]  (%p3730_p9), %s3566_s26, 128, %s3564_s25, %s1806_s1  }
 0xaa9 PF: > { %s3731_s4 = sld [smem:[#allocation34_spill]]  ;;  %s3732_s5 = sld [smem:[#allocation44_spill]] }
 0xaaa   : > { %p3734_p5 = scmp.ge.s32.totalorder %s2859_s23, 2 }
 0xaaf   : > { %s1832_s30 = sand.u32 1, %s3731_s4   ;;  %p3733_p1 = scmp.ne.s32.totalorder %s3732_s5, 0 }
 0xab0   : > { %s1833_s29 = scalar_lea.sflag [#allocation10], %s1832_s30 }
 0xab1   : > { %p2355_p7 = pnand %p3734_p5, %p3733_p1 }
 0xab3   : > { %2834 = dma.done.wait (!%p2355_p7), %s1833_s29, 128  }
 0xab4   : > { %2836 = vsyncadd (!%p2355_p7), %s1833_s29, 4294967168  ;;  %s40_s23 = sadd.s32 1, %s2859_s23   ;;  %s3735_s18 = sld [smem:[#allocation35_spill]] }
 0xab5   : > { %p37_p13 = scmp.ge.s32.totalorder %s40_s23, 4   ;;  %s3736_s19 = sld [smem:[#allocation36_spill]] }
 0xab6   : > { %s3737_s20 = sld [smem:[#allocation43_spill]]  ;;  %s3738_s14 = sld [smem:[#allocation40_spill]] }
 0xab7   : > { %s3739_s21 = smov %s2855_s22  ;;  %39 = sbr.rel (!%p37_p13) target bundleno = 24 (0x18), region = 216 }
 0xabc   : > { %s3740_s22 = smov %s3738_s14 }
 0xabe   :  { %1838 = vsyncpa [#allocation9], 1 }
 0xabf   :  { %1840 = vsyncpa [#allocation9 + $0x1], 1 }
 0xac0   :  { %1841 = vsyncpa [#allocation12], 1 }
 0xac1   :  { %1843 = vsyncpa [#allocation12 + $0x1], 1 }
 0xac2   :  { %1844 = vsyncpa [#allocation15], 1 }
 0xac3   :  { %1846 = vsyncpa [#allocation15 + $0x1], 1 }
 0xac4   :  { %1847 = vsyncpa [#allocation18], 1 }
 0xac5   :  { %1848 = vsyncpa [#allocation21], 1 }
 0xac6   :  { %1849 = vsyncpa [#allocation24], 1 }
 0xac7   :  { %1850 = vsyncpa [#allocation10], 1 }
 0xac8   :  { %1852 = vsyncpa [#allocation10 + $0x1], 1 }

</bundles_post_ra>
